<compile_context>
chip_gen: v5e
topology: v5e:2x2
jax: 0.10.0
libtpu: 0.0.40
codegen_flags: <defaults>
</compile_context>

<pallas_src>
import functools
import math

import jax
import jax.numpy as jnp
from jax.experimental import pallas as pl
from jax.experimental.pallas import tpu as pltpu


# 64 MiB: generous on v5e/v6e (128 MiB physical) while staying within v7x's 64 MiB.
_VMEM_LIMIT = 64 * 1024 * 1024
_NEG_INF = -1e30


def _choose_tile(dim, candidates):
    """Largest candidate that divides `dim`, else the full dim (always legal)."""
    for c in candidates:
        if dim % c == 0:
            return c
    return dim


# ----------------------- tiled, pipelined matmul (projections) -----------------------

def _matmul_kernel(x_ref, w_ref, o_ref, acc_ref):
    @pl.when(pl.program_id(2) == 0)
    def _():
        acc_ref[...] = jnp.zeros_like(acc_ref)

    acc_ref[...] += jnp.dot(x_ref[...], w_ref[...],
                            preferred_element_type=jnp.float32)

    @pl.when(pl.program_id(2) == pl.num_programs(2) - 1)
    def _():
        o_ref[...] = acc_ref[...].astype(o_ref.dtype)


def matmul(x, w):
    """x: (M, K), w: (K, N) (already transposed from torch's (out, in) layout)."""
    M, K = x.shape
    K2, N = w.shape
    assert K == K2
    # Prefer 512/256 tiles (256-granular MXUs on v6e/v7x; big tiles -> HBM roofline).
    tm = _choose_tile(M, (512, 256, 128, 64, 32, 16, 8))
    tn = _choose_tile(N, (512, 256, 128))   # lane dim: multiple of 128 or full
    tk = _choose_tile(K, (512, 256, 128))
    grid = (M // tm, N // tn, K // tk)
    itm = x.dtype.itemsize
    cost = pl.CostEstimate(flops=2 * M * N * K, transcendentals=0,
                           bytes_accessed=int(itm * (M * K + K * N + M * N)))
    return pl.pallas_call(
        _matmul_kernel,
        out_shape=jax.ShapeDtypeStruct((M, N), x.dtype),
        grid=grid,
        in_specs=[
            pl.BlockSpec((tm, tk), lambda i, j, k: (i, k)),
            pl.BlockSpec((tk, tn), lambda i, j, k: (k, j)),
        ],
        out_specs=pl.BlockSpec((tm, tn), lambda i, j, k: (i, j)),
        scratch_shapes=[pltpu.VMEM((tm, tn), jnp.float32)],
        compiler_params=pltpu.CompilerParams(
            # TODO(synk): on v7x, CORE_PARALLEL on the leading axes would shard across
            # the two TensorCores; kept as plain strings for portability.
            dimension_semantics=("parallel", "parallel", "arbitrary"),
            vmem_limit_bytes=_VMEM_LIMIT),
        cost_estimate=cost,
    )(x, w)


# --------------------- flash attention with fused RoPE + causal DMA skip ---------------------

def _flash_kernel(qi_map_ref, ki_map_ref,                      # scalar-prefetch (SMEM)
                  cosq_ref, sinq_ref, cosk_ref, sink_ref,      # rope tables (q rows / k rows)
                  q_ref, k_ref, v_ref,                         # column-block views of qkv
                  o_ref,
                  m_scr, l_scr, acc_scr, q_scr, k_scr,
                  *, groups, head_dim, rot_dim, q_tile, kv_tile, scale, approx_recip):
    t = pl.program_id(2)
    qi = qi_map_ref[t]
    ki = ki_map_ref[t]
    D = head_dim
    half = rot_dim // 2

    # ---- init + RoPE/scale q once per q tile (q block is resident across kv blocks) ----
    @pl.when(ki == 0)
    def _():
        m_scr[...] = jnp.full_like(m_scr, -jnp.inf)
        l_scr[...] = jnp.zeros_like(l_scr)
        acc_scr[...] = jnp.zeros_like(acc_scr)

        qblk = q_ref[0].astype(jnp.float32)            # (tq, groups*D)
        cq = cosq_ref[0].astype(jnp.float32)           # (tq, rot_dim)
        sq = sinq_ref[0].astype(jnp.float32)
        c1, c2 = cq[:, :half], cq[:, half:]
        s1, s2 = sq[:, :half], sq[:, half:]
        for g in range(groups):                        # D = 128 -> lane-aligned slices
            base = g * D
            x1 = qblk[:, base:base + half]
            x2 = qblk[:, base + half:base + rot_dim]
            q_scr[:, base:base + half] = (scale * (x1 * c1 - x2 * s1)).astype(q_scr.dtype)
            q_scr[:, base + half:base + rot_dim] = (
                scale * (x2 * c2 + x1 * s2)).astype(q_scr.dtype)
            if rot_dim < D:                            # partial-rotary pass-through
                q_scr[:, base + rot_dim:base + D] = (
                    scale * qblk[:, base + rot_dim:base + D]).astype(q_scr.dtype)

    def _process(apply_mask):
        # RoPE the K block (once per kv block, shared by the whole GQA group).
        kblk = k_ref[0].astype(jnp.float32)            # (tk, D)
        ck = cosk_ref[0].astype(jnp.float32)
        sk = sink_ref[0].astype(jnp.float32)
        k_scr[:, :half] = (kblk[:, :half] * ck[:, :half]
                           - kblk[:, half:rot_dim] * sk[:, :half]).astype(k_scr.dtype)
        k_scr[:, half:rot_dim] = (kblk[:, half:rot_dim] * ck[:, half:]
                                  + kblk[:, :half] * sk[:, half:]).astype(k_scr.dtype)
        if rot_dim < D:
            k_scr[:, rot_dim:] = kblk[:, rot_dim:].astype(k_scr.dtype)

        k_t = k_scr[...].T                             # one XLU transpose per kv block
        v_blk = v_ref[0]                               # (tk, D), compute dtype

        if apply_mask:
            # Diagonal block only (tq == tk): local row >= col is the causal mask.
            row = jax.lax.broadcasted_iota(jnp.int32, (q_tile, kv_tile), 0)
            col = jax.lax.broadcasted_iota(jnp.int32, (q_tile, kv_tile), 1)
            causal = row >= col

        for g in range(groups):
            qg = q_scr[:, g * D:(g + 1) * D]           # pre-roped, pre-scaled
            s = jnp.dot(qg, k_t, preferred_element_type=jnp.float32)   # (tq, tk) fp32
            if apply_mask:
                s = jnp.where(causal, s, _NEG_INF)
            m_prev = m_scr[:, g:g + 1]
            m_cur = jnp.maximum(m_prev, jnp.max(s, axis=-1, keepdims=True))
            alpha = jnp.exp(m_prev - m_cur)
            p = jnp.exp(s - m_cur)
            l_scr[:, g:g + 1] = alpha * l_scr[:, g:g + 1] + jnp.sum(p, axis=-1,
                                                                    keepdims=True)
            m_scr[:, g:g + 1] = m_cur
            acc_scr[:, g * D:(g + 1) * D] = (
                alpha * acc_scr[:, g * D:(g + 1) * D]
                + jnp.dot(p.astype(v_blk.dtype), v_blk,
                          preferred_element_type=jnp.float32))

    on_diag = qi == ki

    # Interior (fully unmasked) blocks: no iota / compare / select.
    @pl.when(jnp.logical_not(on_diag))
    def _():
        _process(apply_mask=False)

    # Diagonal block = masked block = last kv block for this q tile -> finalize here.
    @pl.when(on_diag)
    def _():
        _process(apply_mask=True)
        for g in range(groups):
            inv = pl.reciprocal(l_scr[:, g:g + 1], approx=approx_recip)
            o_ref[0, :, g * D:(g + 1) * D] = (
                acc_scr[:, g * D:(g + 1) * D] * inv).astype(o_ref.dtype)


def flash_attention(qkv, cos, sin, *, num_heads, num_kv_heads, head_dim, rot_dim, scale):
    """qkv: (B, S, H*D + 2*Hk*D) token-major output of the fused QKV projection.

    Returns (B, S, H*D) attention output (token-major, ready for o_proj)."""
    B, S, _ = qkv.shape
    assert num_heads % num_kv_heads == 0
    # TODO(synk): head_dim that is not a multiple of 128 needs a padded / full-slab
    # fallback (lane alignment of the per-head blocks); not needed for this config.
    assert head_dim % 128 == 0, "flash_attention requires head_dim % 128 == 0"
    G = num_heads // num_kv_heads
    D = head_dim
    NQ = num_heads * D
    NK = num_kv_heads * D

    # q_tile capped at 256 so the working set also fits v7x's 64 MiB VMEM
    # (raise toward 512 on v5e/v6e if desired).
    tq = _choose_tile(S, (256, 128, 64, 32, 16, 8))
    tk = tq
    n_q = S // tq

    # Lower-triangular (causal) block enumeration: future KV blocks are never even
    # DMA'd, and the diagonal block is always the last one for its q tile.
    qi_list, ki_list = [], []
    for qi in range(n_q):
        for ki in range(qi + 1):
            qi_list.append(qi)
            ki_list.append(ki)
    qi_map = jnp.asarray(qi_list, dtype=jnp.int32)
    ki_map = jnp.asarray(ki_list, dtype=jnp.int32)
    T = len(qi_list)

    k_off = NQ // D            # column-block offset of K inside qkv (in units of D)
    v_off = (NQ + NK) // D     # column-block offset of V inside qkv

    kernel = functools.partial(
        _flash_kernel, groups=G, head_dim=D, rot_dim=rot_dim,
        q_tile=tq, kv_tile=tk, scale=scale,
        approx_recip=(qkv.dtype == jnp.bfloat16))

    grid_spec = pltpu.PrefetchScalarGridSpec(
        num_scalar_prefetch=2,
        grid=(B, num_kv_heads, T),
        in_specs=[
            # rope tables for the q rows (constant across a q-tile segment -> 1 fetch)
            pl.BlockSpec((1, tq, rot_dim), lambda b, j, t, qm, km: (b, qm[t], 0)),
            pl.BlockSpec((1, tq, rot_dim), lambda b, j, t, qm, km: (b, qm[t], 0)),
            # rope tables for the k rows
            pl.BlockSpec((1, tk, rot_dim), lambda b, j, t, qm, km: (b, km[t], 0)),
            pl.BlockSpec((1, tk, rot_dim), lambda b, j, t, qm, km: (b, km[t], 0)),
            # q / k / v column-block views of the fused qkv array (GQA via block index j)
            pl.BlockSpec((1, tq, G * D), lambda b, j, t, qm, km: (b, qm[t], j)),
            pl.BlockSpec((1, tk, D), lambda b, j, t, qm, km: (b, km[t], k_off + j)),
            pl.BlockSpec((1, tk, D), lambda b, j, t, qm, km: (b, km[t], v_off + j)),
        ],
        out_specs=pl.BlockSpec((1, tq, G * D), lambda b, j, t, qm, km: (b, qm[t], j)),
        scratch_shapes=[
            pltpu.VMEM((tq, G), jnp.float32),       # running max (per group head)
            pltpu.VMEM((tq, G), jnp.float32),       # running denominator
            pltpu.VMEM((tq, G * D), jnp.float32),   # fp32 output accumulator
            pltpu.VMEM((tq, G * D), qkv.dtype),     # roped + pre-scaled q (resident)
            pltpu.VMEM((tk, D), qkv.dtype),         # roped k for the current block
        ],
    )

    itm = qkv.dtype.itemsize
    cost = pl.CostEstimate(
        flops=int(2 * B * num_heads * S * S * D),          # ~causal half of 4*S*S*D
        transcendentals=int(B * num_heads * S * S // 2),
        bytes_accessed=int(itm * (B * S * (NQ + 2 * NK) + B * S * NQ)))

    return pl.pallas_call(
        kernel,
        out_shape=jax.ShapeDtypeStruct((B, S, NQ), qkv.dtype),
        grid_spec=grid_spec,
        compiler_params=pltpu.CompilerParams(
            dimension_semantics=("parallel", "parallel", "arbitrary"),
            vmem_limit_bytes=_VMEM_LIMIT),
        cost_estimate=cost,
    )(qi_map, ki_map, cos, sin, cos, sin, qkv, qkv, qkv)


# ------------------------------- module wrapper (glue) ---------------------------------

def prepare_params(params, compute_dtype=jnp.bfloat16):
    """Cache the fused/transposed projection weights (done once, not per forward)."""
    w_qkv_t = jnp.concatenate(
        [params["wq"], params["wk"], params["wv"]], axis=0).T.astype(compute_dtype)
    wo_t = params["wo"].T.astype(compute_dtype)
    return {"w_qkv_t": w_qkv_t, "wo_t": wo_t}


def nemotron_attention_forward(hidden_states, cos, sin, prepared, cfg,
                               compute_dtype=jnp.bfloat16):
    """hidden_states: (B, S, hidden); cos/sin: (B, S, rot_dim). Returns (B, S, hidden).

    Eval-mode causal attention (dropout=0); the causal mask is generated in-kernel."""
    B, S, hidden = hidden_states.shape
    H, Hk, D = cfg["num_heads"], cfg["num_kv_heads"], cfg["head_dim"]
    rot_dim = cos.shape[-1]
    scale = 1.0 / math.sqrt(D)
    NQ, NK = H * D, Hk * D

    x2d = hidden_states.reshape(B * S, hidden).astype(compute_dtype)

    # Fused q/k/v projection: one wide MXU matmul; output stays fused and token-major.
    qkv = matmul(x2d, prepared["w_qkv_t"]).reshape(B, S, NQ + 2 * NK)

    # Flash attention with fused RoPE + scaling; reads q/k/v straight out of `qkv`.
    attn = flash_attention(qkv, cos, sin, num_heads=H, num_kv_heads=Hk,
                           head_dim=D, rot_dim=rot_dim, scale=scale)

    out = matmul(attn.reshape(B * S, NQ), prepared["wo_t"]).reshape(B, S, hidden)
    return out.astype(hidden_states.dtype)


# ---------------------------------- pure-JAX reference ----------------------------------

def _rotate_half(x):
    half = x.shape[-1] // 2
    return jnp.concatenate([-x[..., half:], x[..., :half]], axis=-1)


def reference_forward(hidden_states, cos, sin, params, cfg):
    B, S, hidden = hidden_states.shape
    H, Hk, D = cfg["num_heads"], cfg["num_kv_heads"], cfg["head_dim"]
    groups = H // Hk
    rot_dim = cos.shape[-1]

    q = (hidden_states @ params["wq"].T).reshape(B, S, H, D).transpose(0, 2, 1, 3)
    k = (hidden_states @ params["wk"].T).reshape(B, S, Hk, D).transpose(0, 2, 1, 3)
    v = (hidden_states @ params["wv"].T).reshape(B, S, Hk, D).transpose(0, 2, 1, 3)

    c = cos[:, None, :, :]
    s = sin[:, None, :, :]
    q_rot, q_pass = q[..., :rot_dim], q[..., rot_dim:]
    k_rot, k_pass = k[..., :rot_dim], k[..., rot_dim:]
    q = jnp.concatenate([q_rot * c + _rotate_half(q_rot) * s, q_pass], axis=-1)
    k = jnp.concatenate([k_rot * c + _rotate_half(k_rot) * s, k_pass], axis=-1)

    k = jnp.repeat(k, groups, axis=1)
    v = jnp.repeat(v, groups, axis=1)

    neg = jnp.finfo(jnp.float32).min
    causal = jnp.where(jnp.tril(jnp.ones((S, S), dtype=bool)), 0.0, neg)

    w = jnp.einsum("bhqd,bhkd->bhqk", q, k) / math.sqrt(D)
    w = w + causal[None, None]
    w = jax.nn.softmax(w.astype(jnp.float32), axis=-1).astype(q.dtype)
    o = jnp.einsum("bhqk,bhkd->bhqd", w, v)
    o = o.transpose(0, 2, 1, 3).reshape(B, S, H * D)
    return o @ params["wo"].T


# ------------------------------------------ main ----------------------------------------

if __name__ == "__main__":
    # Small NemotronConfig-like settings (head_dim=128 keeps per-head lane slices aligned).
    cfg = dict(
        hidden_size=64,
        num_heads=4,
        num_kv_heads=2,
        head_dim=128,
        rope_theta=10000.0,
        partial_rotary_factor=0.5,
    )
    B, S = 2, 512
    hidden = cfg["hidden_size"]
    H, Hk, D = cfg["num_heads"], cfg["num_kv_heads"], cfg["head_dim"]
    rot_dim = int(D * cfg["partial_rotary_factor"])

    key = jax.random.PRNGKey(0)
    kx, kq, kk, kv, ko = jax.random.split(key, 5)

    hidden_states = jax.random.normal(kx, (B, S, hidden), dtype=jnp.float32)
    params = {
        "wq": (1.0 / math.sqrt(hidden)) * jax.random.normal(kq, (H * D, hidden), jnp.float32),
        "wk": (1.0 / math.sqrt(hidden)) * jax.random.normal(kk, (Hk * D, hidden), jnp.float32),
        "wv": (1.0 / math.sqrt(hidden)) * jax.random.normal(kv, (Hk * D, hidden), jnp.float32),
        "wo": (1.0 / math.sqrt(H * D)) * jax.random.normal(ko, (hidden, H * D), jnp.float32),
    }

    # rotary embedding tables (partial rotary: rot_dim features)
    inv_freq = 1.0 / (cfg["rope_theta"] ** (jnp.arange(0, rot_dim, 2, dtype=jnp.float32) / rot_dim))
    pos = jnp.arange(S, dtype=jnp.float32)
    freqs = pos[:, None] * inv_freq[None, :]            # (S, rot_dim/2)
    emb = jnp.concatenate([freqs, freqs], axis=-1)      # (S, rot_dim)
    cos = jnp.broadcast_to(jnp.cos(emb)[None], (B, S, rot_dim))
    sin = jnp.broadcast_to(jnp.sin(emb)[None], (B, S, rot_dim))

    # Accurate fp32 reference.
    with jax.default_matmul_precision("highest"):
        ref = reference_forward(hidden_states, cos, sin, params, cfg)
    ref = jax.block_until_ready(ref)

    # fp32 compute path (tight-ish check of the kernel structure).
    prep_f32 = prepare_params(params, compute_dtype=jnp.float32)
    out_f32 = nemotron_attention_forward(hidden_states, cos, sin, prep_f32, cfg,
                                         compute_dtype=jnp.float32)
    out_f32 = jax.block_until_ready(out_f32)
    assert out_f32.shape == (B, S, hidden)
    err32 = float(jnp.max(jnp.abs(out_f32 - ref)))
    assert err32 < 5e-2, f"fp32 path max abs err {err32}"

    # bf16 compute path (the perf-recommended configuration: bf16 MXU inputs, fp32 accum).
    prep_bf16 = prepare_params(params, compute_dtype=jnp.bfloat16)
    out_bf16 = nemotron_attention_forward(hidden_states, cos, sin, prep_bf16, cfg,
                                          compute_dtype=jnp.bfloat16)
    out_bf16 = jax.block_until_ready(out_bf16)
    errbf = float(jnp.max(jnp.abs(out_bf16.astype(jnp.float32) - ref)))
    assert errbf < 0.3, f"bf16 path max abs err {errbf}"

    # TODO(synk): attention_dropout > 0 (training), past_key_value KV-cache update, and
    # arbitrary (non-causal / padding) attention masks are not implemented; the kernel
    # generates the standard causal mask in-kernel (module default: dropout=0.0, causal).
    print("KERNEL_OK")
</pallas_src>

<mosaic_0001>
module attributes {stable_mosaic.version = 11 : i64} {
  func.func @_matmul_kernel(%arg0: i32, %arg1: i32, %arg2: i32, %arg3: memref<512x64xf32, #tpu.memory_space<vmem>>, %arg4: memref<64x512xf32, #tpu.memory_space<vmem>>, %arg5: memref<512x512xf32, #tpu.memory_space<vmem>>, %arg6: memref<512x512xf32, #tpu.memory_space<vmem>>) attributes {dimension_semantics = [#tpu.dimension_semantics<parallel>, #tpu.dimension_semantics<parallel>, #tpu.dimension_semantics<arbitrary>], iteration_bounds = array<i64: 2, 2, 1>, scalar_prefetch = 0 : i64, scratch_operands = 1 : i64, tpu.core_type = #tpu.core_type<tc>, window_params = [{transform_indices = @transform_0, window_bounds = array<i64: 512, 64>}, {transform_indices = @transform_1, window_bounds = array<i64: 64, 512>}, {transform_indices = @transform_2, window_bounds = array<i64: 512, 512>}]} {
    %c0_i32 = arith.constant 0 : i32
    %0 = arith.cmpi eq, %arg2, %c0_i32 : i32
    %1 = arith.extui %0 : i1 to i32
    %c0_i32_0 = arith.constant 0 : i32
    %2 = arith.cmpi ne, %1, %c0_i32_0 : i32
    scf.if %2 {
      %cst_10 = arith.constant 0.000000e+00 : f32
      %12 = vector.broadcast %cst_10 : f32 to vector<512x512xf32>
      %c0_11 = arith.constant 0 : index
      %c0_12 = arith.constant 0 : index
      %13 = vector.load %arg6[%c0_11, %c0_12] : memref<512x512xf32, #tpu.memory_space<vmem>>, vector<512x512xf32>
      tpu.vector_store %arg6[%c0_11, %c0_12], %12 {strides = array<i32>} : memref<512x512xf32, #tpu.memory_space<vmem>>, vector<512x512xf32>,
    } else {
    }
    %c0 = arith.constant 0 : index
    %c0_1 = arith.constant 0 : index
    %3 = vector.load %arg6[%c0, %c0_1] : memref<512x512xf32, #tpu.memory_space<vmem>>, vector<512x512xf32>
    %c0_2 = arith.constant 0 : index
    %c0_3 = arith.constant 0 : index
    %4 = vector.load %arg3[%c0_2, %c0_3] : memref<512x64xf32, #tpu.memory_space<vmem>>, vector<512x64xf32>
    %c0_4 = arith.constant 0 : index
    %c0_5 = arith.constant 0 : index
    %5 = vector.load %arg4[%c0_4, %c0_5] : memref<64x512xf32, #tpu.memory_space<vmem>>, vector<64x512xf32>
    %cst = arith.constant dense<0.000000e+00> : vector<512x512xf32>
    %6 = tpu.matmul %4, %5, %cst {dimension_numbers = #tpu.dot_dimension_numbers<[1], [0], [0], [1], [0, 0, 1, 1], [], []>} : vector<512x64xf32>, vector<64x512xf32>, vector<512x512xf32> -> vector<512x512xf32>
    %7 = arith.addf %3, %6 : vector<512x512xf32>
    %c0_6 = arith.constant 0 : index
    %c0_7 = arith.constant 0 : index
    %8 = vector.load %arg6[%c0_6, %c0_7] : memref<512x512xf32, #tpu.memory_space<vmem>>, vector<512x512xf32>
    tpu.vector_store %arg6[%c0_6, %c0_7], %7 {strides = array<i32>} : memref<512x512xf32, #tpu.memory_space<vmem>>, vector<512x512xf32>,
    %c0_i32_8 = arith.constant 0 : i32
    %9 = arith.cmpi eq, %arg2, %c0_i32_8 : i32
    %10 = arith.extui %9 : i1 to i32
    %c0_i32_9 = arith.constant 0 : i32
    %11 = arith.cmpi ne, %10, %c0_i32_9 : i32
    scf.if %11 {
      %c0_10 = arith.constant 0 : index
      %c0_11 = arith.constant 0 : index
      %12 = vector.load %arg6[%c0_10, %c0_11] : memref<512x512xf32, #tpu.memory_space<vmem>>, vector<512x512xf32>
      %c0_12 = arith.constant 0 : index
      %c0_13 = arith.constant 0 : index
      %13 = vector.load %arg5[%c0_12, %c0_13] : memref<512x512xf32, #tpu.memory_space<vmem>>, vector<512x512xf32>
      tpu.vector_store %arg5[%c0_12, %c0_13], %12 {strides = array<i32>} : memref<512x512xf32, #tpu.memory_space<vmem>>, vector<512x512xf32>,
    } else {
    }
    return
  }
  func.func @transform_0(%arg0: i32, %arg1: i32, %arg2: i32) -> (i32, i32) {
    %c0_i32 = arith.constant 0 : i32
    return %arg0, %arg2 : i32, i32
  }
  func.func @transform_1(%arg0: i32, %arg1: i32, %arg2: i32) -> (i32, i32) {
    %c0_i32 = arith.constant 0 : i32
    return %arg2, %arg1 : i32, i32
  }
  func.func @transform_2(%arg0: i32, %arg1: i32, %arg2: i32) -> (i32, i32) {
    %c0_i32 = arith.constant 0 : i32
    return %arg0, %arg1 : i32, i32
  }
}

</mosaic_0001>

<bundles_post_ra>
// kernel: tpu_custom_call.1
= control target key start
LH: loop header
LB: loop body
LE: loop exit
PB: predicated region body
PF: predicated region fallthrough
CT: control target
= control target key end

     0   :  { %7 = vsyncpa [#allocation4], 0  ;;  %s4380_s0 = inlined_call_operand.vmem [shape: f32[1024,64], index: 0, kind: input, shape index: {}]   ;;  %s4381_s1 = inlined_call_operand.hbm [shape: f32[64,1024], index: 1, kind: input, shape index: {}]   ;;  %s4382_s2 = inlined_call_operand.hbm [shape: f32[1024,1024], index: 2, kind: output, shape index: {}]  }
   0x1   :  { %9 = vsyncpa [#allocation4 + $0x1], 0 }
   0x2   :  { %10 = vsyncpa [#allocation5], 0 }
   0x3   :  { %12 = vsyncpa [#allocation5 + $0x1], 0  ;;  %s3582_s9 = smov 0   ;;  %s3584_s10 = smov 0  }
   0x4   :  { %s3586_s11 = smov 0   ;;  %s3588_s12 = smov 0  }
   0x5   :  { %s3590_s13 = smov 0   ;;  %s3592_s14 = smov 0  }
   0x6   :  { %s3594_s15 = smov 0   ;;  %s3596_s16 = smov 0  }
   0x7   :  { %s3598_s17 = smov 0   ;;  %s3600_s18 = smov 0  }
   0x8   :  { %s3602_s19 = smov 0  }
   0x9 LB: > { %4386 = sst [smem:[#allocation9_spill]] %s3555_s18  ;;  %s3022_s20 = sadd.s32 4294967295, %s3559_s19   ;;  %s3559_s19 = sphi %s3602_s19, %s18_s19   ;;  %s3555_s18 = sphi %s3600_s18, %s4396_s18   ;;  %s3551_s17 = sphi %s3598_s17, %s4404_s17   ;;  %s3547_s16 = sphi %s3596_s16, %s4394_s16   ;;  %s3543_s15 = sphi %s3594_s15, %s4403_s15   ;;  %s3539_s14 = sphi %s3592_s14, %s4402_s14   ;;  %s3535_s13 = sphi %s3590_s13, %s4401_s13   ;;  %s3531_s12 = sphi %s3588_s12, %s4400_s12   ;;  %s3527_s11 = sphi %s3586_s11, %s4399_s11   ;;  %s3523_s10 = sphi %s3584_s10, %s4398_s10   ;;  %s3519_s9 = sphi %s3582_s9, %s4397_s9  }
   0xa   : > { %s3023_s21 = sadd.s32 4294967294, %s3559_s19   ;;  %s33_s22 = sadd.s32 1, %s3551_s17 }
   0xb   : > { %s37_s23 = sadd.s32 1, %s3555_s18  ;;  %p35_p0 = scmp.ge.s32.totalorder %s33_s22, 2 }
   0xc   : > { %s74_s24 = sadd.s32 1, %s3539_s14  ;;  %p81_p1 = scmp.ne.s32.totalorder %s3539_s14, %s3535_s13 }
   0xd   : > { %p82_p2 = scmp.eq.s32.totalorder %s3559_s19, 0  ;;  %s4406_s22 = smov (%p35_p0, %s33_s22), 0 }
   0xe   : > { %4387 = sst [smem:[#allocation10_spill]] %s4406_s22  ;;  %s4408_s23 = smov (!%p35_p0, %s37_s23), %s3555_s18 }
   0xf   : > { %s70_s25 = ssub.s32 %s3551_s17, %s4406_s22  ;;  %p3648_p3 = por %p82_p2, %p81_p1 }
  0x10   : > { %p39_p4 = scmp.ge.s32.totalorder %s4408_s23, 2  ;;  %p72_p5 = scmp.eq.s32.totalorder %s70_s25, 0 }
  0x11   : > { %p87_p6 = scmp.ne.s32.totalorder %s3535_s13, %s3531_s12  ;;  %p88_p7 = scmp.eq.s32.totalorder %s3022_s20, 0 }
  0x12   : > { %s4410_s23 = smov (%p39_p4, %s4408_s23), 0  ;;  %s102_s3 = sadd.s32 1, %s3527_s11 }
  0x13   : > { %4389 = sst [smem:[#allocation11_spill]] %s4410_s23  ;;  %p3658_p8 = por %p88_p7, %p87_p6 }
  0x14   : > { %s3656_s27 = scalar_select %p72_p5, %s3539_s14, %s74_s24  }
  0x15   : > { %s97_s29 = ssub.s32 %s3555_s18, %s4410_s23  ;;  %p112_p10 = scmp.ne.s32.totalorder %s3527_s11, %s3523_s10 }
  0x16   : > { %s99_s30 = sor.u32 %s97_s29, %s70_s25  ;;  %p113_p11 = scmp.eq.s32.totalorder %s3022_s20, 3 }
  0x17   : > { %p100_p9 = scmp.eq.s32.totalorder %s99_s30, 0  ;;  %p118_p12 = scmp.ne.s32.totalorder %s3523_s10, %s3519_s9 }
  0x18   : > { %p3672_p13 = por %p113_p11, %p112_p10  ;;  %p119_p0 = scmp.eq.s32.totalorder %s3023_s21, 3 }
  0x19   : > { %s3670_s4 = scalar_select %p100_p9, %s3527_s11, %s102_s3  }
  0x1a   : > { %p3311_p1 = scmp.lt.s32.totalorder %s3559_s19, 4  ;;  %p3677_p2 = por %p119_p0, %p118_p12 }
  0x1b   : > { %s151_s7 = sand.u32 1, %s3539_s14   ;;  %s3297_s12 = sshll.u32 %s3551_s17, 5 }
  0x1c   : > { %s3026_s8 = sshll.u32 %s151_s7, 8  ;;  %s163_s25 = scalar_lea.hbm %s4381_s1, %s3297_s12 }
  0x1d   : > { %s155_s29 = scalar_lea.vmem [#allocation3], %s3026_s8  ;;  %s164_s3 = sshll.u32 %s163_s25, 4  ;;  %s165_s3 = int_to_ptr.hbm [resolvable:$true] %s164_s3 }
  0x1e   : > { %s166_s30 = sshll.u32 %s155_s29, 4  ;;  %p3304_p4 = pnand %p3311_p1, %p3648_p3  ;;  %s167_s30 = int_to_ptr.vmem [resolvable:$true] %s166_s30 }
  0x1f   : > { %s152_s21 = scalar_lea.sflag [#allocation4], %s151_s7  ;;  %s3561_s23 = smov 1024  }
  0x20   : > { %s3562_s22 = smov 512   ;;  %s3563_s18 = smov 32  }
  0x21   : > { %3306 = dma.hbm_to_vmem [thread:$0]  (!%p3304_p4), %s165_s3, 4096, %s167_s30, %s152_s21, %s3561_s23, %s3562_s22, %s3563_s18  }
  0x22   : > { %p3029_p5 = scmp.ge.s32.totalorder %s3559_s19, 1  ;;  %p174_p6 = scmp.lt.s32.totalorder %s3559_s19, 5 }
  0x24   : > { %p175_p7 = pnand %p3029_p5, %p174_p6 }
  0x25   : > { %s180_s20 = sand.u32 (!%p175_p7), 1, %s3535_s13  }
  0x26   : > { %178 = sbr.rel (%p175_p7) target bundleno = 702 (0x2be), region = 28  ;;  %s3030_s12 = sshll.u32 (!%p175_p7), %s180_s20, 8 }
  0x27   : > { %s181_s8 = scalar_lea.sflag (!%p175_p7), [#allocation4], %s180_s20  ;;  %s3691_s24 = scalar_lea.vmem (!%p175_p7), [#allocation3], %s3030_s12 }
  0x2b   : > { %3510 = dma.done.wait (%p3658_p8), %s181_s8, 4096  }
  0x2c   : > { %3512 = vsyncadd (%p3658_p8), %s181_s8, 4294963200  ;;  %s3032_s18 = sshll.u32 %s3547_s16, 6  ;;  %v837_v0 = vld [vmem:[%s3691_s24 + $0xf0] sm:$0xff]  ;;  %v838_v1 = vld [vmem:[%s3691_s24 + $0xf8] sm:$0xff]  ;;  %vm839_vm0 = vcmask 523264   ;;  %s211_s25 = sand.u32 1, %s3523_s10  }
  0x2d   : > { %p3698_p3 = scmp.lt.s32.totalorder %s3032_s18, 127  ;;  %v833_v2 = vld [vmem:[%s3691_s24 + $0xd0] sm:$0xff]  ;;  %1458 = vmatpush.msra.mxu2 %v837_v0  ;;  %1667 = vmatpush.msra.mxu3 %v838_v1  ;;  %v834_v3 = vld [vmem:[%s3691_s24 + $0xd8] sm:$0xff]  ;;  %v835_v6 = vld [vmem:[%s3691_s24 + $0xe0] sm:$0xff]  ;;  %s3031_s29 = sshll.u32 %s211_s25, 11 }
  0x2e   : > { %v829_v4 = vld [vmem:[%s3691_s24 + $0xb0] sm:$0xff]  ;;  %v830_v5 = vld [vmem:[%s3691_s24 + $0xb8] sm:$0xff]  ;;  %v836_v7 = vld [vmem:[%s3691_s24 + $0xe8] sm:$0xff]  ;;  %1040 = vmatpush.msra.mxu0 %v835_v6  ;;  %s3830_s30 = scalar_lea.vmem [#allocation6], %s3031_s29  ;;  %s3292_s3 = sshll.u32 %s3543_s15, 2 }
  0x2f   : > { %1459 = vmatpush.msra.mxu2 %v833_v2  ;;  %1668 = vmatpush.msra.mxu3 %v834_v3  ;;  %v831_v8 = vld [vmem:[%s3691_s24 + $0xc0] sm:$0xff]  ;;  %v832_v9 = vld [vmem:[%s3691_s24 + $0xc8] sm:$0xff]  ;;  %s4412_s18 = smov (!%p3698_p3, %s3032_s18), 127  ;;  %v825_v10 = vld [vmem:[%s3691_s24 + $0x90] sm:$0xff]  ;;  %s3298_s21 = sshll.u32 %s3547_s16, 9 }
  0x30   : > { %1249 = vmatpush.msra.mxu1 %v836_v7  ;;  %v826_v11 = vld [vmem:[%s3691_s24 + $0x98] sm:$0xff]  ;;  %v827_v12 = vld [vmem:[%s3691_s24 + $0xa0] sm:$0xff]  ;;  %v828_v13 = vld [vmem:[%s3691_s24 + $0xa8] sm:$0xff]  ;;  %1041 = vmatpush.msra.mxu0 %v831_v8  ;;  %s3033_s23 = sshll.u32 %s4412_s18, 3  ;;  %s2908_s20 = sadd.s32 %s3298_s21, %s3292_s3 }
  0x31   : > { %1460 = vmatpush.msra.mxu2 %v829_v4  ;;  %1669 = vmatpush.msra.mxu3 %v830_v5  ;;  %v821_v14 = vld [vmem:[%s3691_s24 + $0x70] sm:$0xff]  ;;  %v822_v15 = vld [vmem:[%s3691_s24 + $0x78] sm:$0xff]  ;;  %v823_v16 = vld [vmem:[%s3691_s24 + $0x80] sm:$0xff]  ;;  %s3734_s7 = scalar_lea.vmem %s4380_s0, %s3033_s23  ;;  %s3294_s12 = sshll.u32 %s2908_s20, 3 }
  0x32   : > { %1250 = vmatpush.msra.mxu1 %v832_v9  ;;  %v824_v17 = vld [vmem:[%s3691_s24 + $0x88] sm:$0xff]  ;;  %1042 = vmatpush.msra.mxu0 %v827_v12  ;;  %v817_v18 = vld [vmem:[%s3691_s24 + $0x50] sm:$0xff]  ;;  %v818_v19 = vld [vmem:[%s3691_s24 + $0x58] sm:$0xff]  ;;  %s2910_s15 = scalar_lea.hbm %s4382_s2, %s3294_s12  ;;  %s2911_s16 = sshll.u32 %s3830_s30, 4  ;;  %s2912_s16 = int_to_ptr.vmem [resolvable:$true] %s2911_s16 }
  0x33   : > { %1461 = vmatpush.msra.mxu2 %v825_v10  ;;  %1670 = vmatpush.msra.mxu3 %v826_v11  ;;  %v819_v20 = vld [vmem:[%s3691_s24 + $0x60] sm:$0xff]  ;;  %v820_v21 = vld [vmem:[%s3691_s24 + $0x68] sm:$0xff]  ;;  %v813_v22 = vld [vmem:[%s3691_s24 + $0x30] sm:$0xff]  ;;  %s2913_s18 = sshll.u32 %s2910_s15, 4  ;;  %s2896_s22 = scalar_lea.sflag [#allocation5], %s211_s25  ;;  %s2914_s18 = int_to_ptr.hbm [resolvable:$true] %s2913_s18 }
  0x34   : > { %1251 = vmatpush.msra.mxu1 %v828_v13  ;;  %1043 = vmatpush.msra.mxu0 %v823_v16  ;;  %v814_v23 = vld [vmem:[%s3691_s24 + $0x38] sm:$0xff]  ;;  %v815_v24 = vld [vmem:[%s3691_s24 + $0x40] sm:$0xff]  ;;  %v816_v25 = vld [vmem:[%s3691_s24 + $0x48] sm:$0xff]  ;;  %s3451_s23 = sshra.s32 %s2914_s18, 4  ;;  %s3457_s29 = scalar_lea.hbm %s4382_s2, 8192  ;;  %s3452_s23 = int_to_ptr.hbm [resolvable:$true] %s3451_s23 }
  0x35   : > { %1462 = vmatpush.msra.mxu2 %v821_v14  ;;  %1671 = vmatpush.msra.mxu3 %v822_v15  ;;  %v809_v26 = vld [vmem:[%s3691_s24 + $0x10] sm:$0xff]  ;;  %v810_v27 = vld [vmem:[%s3691_s24 + $0x18] sm:$0xff]  ;;  %v743_v28 = vld [vmem:[%s3734_s7] sm:$0xff]  ;;  %s3453_s26 = scalar_lea.hbm %s3452_s23, 2048  ;;  %p3458_p11 = scmp.lt.s32.totalorder %s3452_s23, %s4382_s2 }
  0x36   : > { %1252 = vmatpush.msra.mxu1 %v824_v17  ;;  %1044 = vmatpush.msra.mxu0 %v819_v20  ;;  %v811_v29 = vld [vmem:[%s3691_s24 + $0x20] sm:$0xff]  ;;  %v812_v30 = vld [vmem:[%s3691_s24 + $0x28] sm:$0xff]  ;;  %v745_v34 = vld [vmem:[%s3734_s7 + $0x10] sm:$0xff]  ;;  %p3454_p8 = scmp.ne.s32.totalorder %s3452_s23, %s3453_s26  ;;  %p3459_p12 = scmp.lt.s32.totalorder %s3457_s29, %s3453_s26 }
  0x37   : > { %1463 = vmatpush.msra.mxu2 %v817_v18  ;;  %1672 = vmatpush.msra.mxu3 %v818_v19  ;;  %v807_v31 = vld [vmem:[%s3691_s24] sm:$0xff]  ;;  %v808_v32 = vld [vmem:[%s3691_s24 + $0x8] sm:$0xff]  ;;  %v746_v35 = vld [vmem:[%s3734_s7 + $0x18] sm:$0xff] }
  0x38   : > { %1253 = vmatpush.msra.mxu1 %v820_v21  ;;  %1045 = vmatpush.msra.mxu0 %v815_v24  ;;  %v744_v33 = vld [vmem:[%s3734_s7 + $0x8] sm:$0xff]  ;;  %v747_v36 = vld [vmem:[%s3734_s7 + $0x20] sm:$0xff]  ;;  %v749_v38 = vld [vmem:[%s3734_s7 + $0x30] sm:$0xff]  ;;  %p3455_p9 = pnand %p3454_p8, %p3672_p13  ;;  %p3460_p0 = por %p3459_p12, %p3458_p11 }
  0x39   : > { %1464 = vmatpush.msra.mxu2 %v813_v22  ;;  %1673 = vmatpush.msra.mxu3 %v814_v23  ;;  %v748_v37 = vld [vmem:[%s3734_s7 + $0x28] sm:$0xff]  ;;  %v750_v39 = vld [vmem:[%s3734_s7 + $0x38] sm:$0xff]  ;;  %v751_v40 = vld [vmem:[%s3734_s7 + $0x40] sm:$0xff] }
  0x3a   : > { %1254 = vmatpush.msra.mxu1 %v816_v25  ;;  %1046 = vmatpush.msra.mxu0 %v811_v29  ;;  %v752_v41 = vld [vmem:[%s3734_s7 + $0x48] sm:$0xff]  ;;  %v753_v42 = vld [vmem:[%s3734_s7 + $0x50] sm:$0xff]  ;;  %v754_v43 = vld [vmem:[%s3734_s7 + $0x58] sm:$0xff]  ;;  %p3456_p10 = pneg %p3455_p9 }
  0x3b   : > { %1465 = vmatpush.msra.mxu2 %v809_v26  ;;  %1674 = vmatpush.msra.mxu3 %v810_v27  ;;  %v755_v44 = vld [vmem:[%s3734_s7 + $0x60] sm:$0xff]  ;;  %v756_v45 = vld [vmem:[%s3734_s7 + $0x68] sm:$0xff]  ;;  %v757_v46 = vld [vmem:[%s3734_s7 + $0x70] sm:$0xff] }
  0x3c   : > { %3162 = vmatmul.msk.f32.vlgmr.msra.gmra.mxu2 %vm839_vm0, %v743_v28  ;;  %3226 = vmatmul.msk.f32.vlgmr.msra.gmra.mxu3 %vm839_vm0, %v743_v28  ;;  %v758_v47 = vld [vmem:[%s3734_s7 + $0x78] sm:$0xff]  ;;  %v759_v48 = vld [vmem:[%s3734_s7 + $0x80] sm:$0xff]  ;;  %v760_v53 = vld [vmem:[%s3734_s7 + $0x88] sm:$0xff]  ;;  %p3461_p1 = pnand %p3460_p0, %p3456_p10 }
  0x3d   : > { %1255 = vmatpush.msra.mxu1 %v812_v30  ;;  %1047 = vmatpush.msra.mxu0 %v807_v31  ;;  %v761_v58 = vld [vmem:[%s3734_s7 + $0x90] sm:$0xff]  ;;  %v762_v63 = vld [vmem:[%s3734_s7 + $0x98] sm:$0xff]  ;;  %v763_v4 = vld [vmem:[%s3734_s7 + $0xa0] sm:$0xff] }
  0x3e   : > { %3034 = vmatmul.msk.f32.vlgmr.msra.gmra.mxu0 %vm839_vm0, %v743_v28  ;;  %v764_v9 = vld [vmem:[%s3734_s7 + $0xa8] sm:$0xff]  ;;  %v765_v14 = vld [vmem:[%s3734_s7 + $0xb0] sm:$0xff]  ;;  %v766_v19 = vld [vmem:[%s3734_s7 + $0xb8] sm:$0xff] }
  0x3f   : > { %1256 = vmatpush.msra.mxu1 %v808_v32  ;;  %v767_v24 = vld [vmem:[%s3734_s7 + $0xc0] sm:$0xff]  ;;  %v768_v29 = vld [vmem:[%s3734_s7 + $0xc8] sm:$0xff] }
  0x40   : > { %3098 = vmatmul.msk.f32.vlgmr.msra.gmra.mxu1 %vm839_vm0, %v743_v28 }
  0x44   : > { %3163 = vmatmul.msk.f32.gmra.mxu2 %vm839_vm0, %v744_v33  ;;  %3227 = vmatmul.msk.f32.gmra.mxu3 %vm839_vm0, %v744_v33 }
  0x46   : > { %3035 = vmatmul.msk.f32.gmra.mxu0 %vm839_vm0, %v744_v33 }
  0x48   : > { %3099 = vmatmul.msk.f32.gmra.mxu1 %vm839_vm0, %v744_v33 }
  0x4c   : > { %3164 = vmatmul.msk.f32.gmra.mxu2 %vm839_vm0, %v745_v34  ;;  %3228 = vmatmul.msk.f32.gmra.mxu3 %vm839_vm0, %v745_v34 }
  0x4e   : > { %3036 = vmatmul.msk.f32.gmra.mxu0 %vm839_vm0, %v745_v34 }
  0x50   : > { %3100 = vmatmul.msk.f32.gmra.mxu1 %vm839_vm0, %v745_v34  ;;  %v769_v34 = vld [vmem:[%s3734_s7 + $0xd0] sm:$0xff] }
  0x54   : > { %3165 = vmatmul.msk.f32.gmra.mxu2 %vm839_vm0, %v746_v35  ;;  %3229 = vmatmul.msk.f32.gmra.mxu3 %vm839_vm0, %v746_v35 }
  0x56   : > { %3037 = vmatmul.msk.f32.gmra.mxu0 %vm839_vm0, %v746_v35 }
  0x58   : > { %3101 = vmatmul.msk.f32.gmra.mxu1 %vm839_vm0, %v746_v35 }
  0x5c   : > { %3166 = vmatmul.msk.f32.gmra.mxu2 %vm839_vm0, %v747_v36  ;;  %3230 = vmatmul.msk.f32.gmra.mxu3 %vm839_vm0, %v747_v36 }
  0x5e   : > { %3038 = vmatmul.msk.f32.gmra.mxu0 %vm839_vm0, %v747_v36 }
  0x60   : > { %3102 = vmatmul.msk.f32.gmra.mxu1 %vm839_vm0, %v747_v36 }
  0x64   : > { %3167 = vmatmul.msk.f32.gmra.mxu2 %vm839_vm0, %v748_v37  ;;  %3231 = vmatmul.msk.f32.gmra.mxu3 %vm839_vm0, %v748_v37 }
  0x66   : > { %3039 = vmatmul.msk.f32.gmra.mxu0 %vm839_vm0, %v748_v37 }
  0x68   : > { %3103 = vmatmul.msk.f32.gmra.mxu1 %vm839_vm0, %v748_v37 }
  0x6c   : > { %3168 = vmatmul.msk.f32.gmra.mxu2 %vm839_vm0, %v749_v38  ;;  %3232 = vmatmul.msk.f32.gmra.mxu3 %vm839_vm0, %v749_v38 }
  0x6e   : > { %3040 = vmatmul.msk.f32.gmra.mxu0 %vm839_vm0, %v749_v38 }
  0x70   : > { %3104 = vmatmul.msk.f32.gmra.mxu1 %vm839_vm0, %v749_v38 }
  0x74   : > { %3169 = vmatmul.msk.f32.gmra.mxu2 %vm839_vm0, %v750_v39  ;;  %3233 = vmatmul.msk.f32.gmra.mxu3 %vm839_vm0, %v750_v39 }
  0x76   : > { %3041 = vmatmul.msk.f32.gmra.mxu0 %vm839_vm0, %v750_v39 }
  0x78   : > { %3105 = vmatmul.msk.f32.gmra.mxu1 %vm839_vm0, %v750_v39  ;;  %v770_v39 = vld [vmem:[%s3734_s7 + $0xd8] sm:$0xff] }
  0x7c   : > { %3170 = vmatmul.msk.f32.gmra.mxu2 %vm839_vm0, %v751_v40  ;;  %3234 = vmatmul.msk.f32.gmra.mxu3 %vm839_vm0, %v751_v40 }
  0x7e   : > { %3042 = vmatmul.msk.f32.gmra.mxu0 %vm839_vm0, %v751_v40 }
  0x80   : > { %3106 = vmatmul.msk.f32.gmra.mxu1 %vm839_vm0, %v751_v40 }
  0x84   : > { %3171 = vmatmul.msk.f32.gmra.mxu2 %vm839_vm0, %v752_v41  ;;  %3235 = vmatmul.msk.f32.gmra.mxu3 %vm839_vm0, %v752_v41 }
  0x86   : > { %3043 = vmatmul.msk.f32.gmra.mxu0 %vm839_vm0, %v752_v41 }
  0x88   : > { %3107 = vmatmul.msk.f32.gmra.mxu1 %vm839_vm0, %v752_v41 }
  0x8c   : > { %3172 = vmatmul.msk.f32.gmra.mxu2 %vm839_vm0, %v753_v42  ;;  %3236 = vmatmul.msk.f32.gmra.mxu3 %vm839_vm0, %v753_v42 }
  0x8e   : > { %3044 = vmatmul.msk.f32.gmra.mxu0 %vm839_vm0, %v753_v42 }
  0x90   : > { %3108 = vmatmul.msk.f32.gmra.mxu1 %vm839_vm0, %v753_v42 }
  0x94   : > { %3173 = vmatmul.msk.f32.gmra.mxu2 %vm839_vm0, %v754_v43  ;;  %3237 = vmatmul.msk.f32.gmra.mxu3 %vm839_vm0, %v754_v43 }
  0x96   : > { %3045 = vmatmul.msk.f32.gmra.mxu0 %vm839_vm0, %v754_v43 }
  0x98   : > { %3109 = vmatmul.msk.f32.gmra.mxu1 %vm839_vm0, %v754_v43 }
  0x9c   : > { %3174 = vmatmul.msk.f32.gmra.mxu2 %vm839_vm0, %v755_v44  ;;  %3238 = vmatmul.msk.f32.gmra.mxu3 %vm839_vm0, %v755_v44 }
  0x9e   : > { %3046 = vmatmul.msk.f32.gmra.mxu0 %vm839_vm0, %v755_v44 }
  0xa0   : > { %3110 = vmatmul.msk.f32.gmra.mxu1 %vm839_vm0, %v755_v44  ;;  %v771_v44 = vld [vmem:[%s3734_s7 + $0xe0] sm:$0xff] }
  0xa4   : > { %3175 = vmatmul.msk.f32.gmra.mxu2 %vm839_vm0, %v756_v45  ;;  %3239 = vmatmul.msk.f32.gmra.mxu3 %vm839_vm0, %v756_v45 }
  0xa6   : > { %3047 = vmatmul.msk.f32.gmra.mxu0 %vm839_vm0, %v756_v45 }
  0xa8   : > { %3111 = vmatmul.msk.f32.gmra.mxu1 %vm839_vm0, %v756_v45 }
  0xac   : > { %3176 = vmatmul.msk.f32.gmra.mxu2 %vm839_vm0, %v757_v46  ;;  %3240 = vmatmul.msk.f32.gmra.mxu3 %vm839_vm0, %v757_v46 }
  0xae   : > { %3048 = vmatmul.msk.f32.gmra.mxu0 %vm839_vm0, %v757_v46 }
  0xb0   : > { %3112 = vmatmul.msk.f32.gmra.mxu1 %vm839_vm0, %v757_v46 }
  0xb4   : > { %3177 = vmatmul.msk.f32.gmra.mxu2 %vm839_vm0, %v758_v47  ;;  %3241 = vmatmul.msk.f32.gmra.mxu3 %vm839_vm0, %v758_v47 }
  0xb6   : > { %3049 = vmatmul.msk.f32.gmra.mxu0 %vm839_vm0, %v758_v47 }
  0xb8   : > { %3113 = vmatmul.msk.f32.gmra.mxu1 %vm839_vm0, %v758_v47 }
  0xbb   : > { %v1049_v49 = vpop.f32.mrf.mxu0 }
  0xbc   : > { %3178 = vmatmul.msk.f32.gmra.mxu2 %vm839_vm0, %v759_v48  ;;  %3242 = vmatmul.msk.f32.gmra.mxu3 %vm839_vm0, %v759_v48  ;;  %2639 = vst [vmem:[%s3830_s30] sm:$0xff] %v1049_v49  ;;  %v772_v49 = vld [vmem:[%s3734_s7 + $0xe8] sm:$0xff] }
  0xbd   : > { %v1258_v50 = vpop.f32.mrf.mxu1 }
  0xbe   : > { %2640 = vst [vmem:[%s3830_s30 + $0x8] sm:$0xff] %v1258_v50  ;;  %3050 = vmatmul.msk.f32.gmra.mxu0 %vm839_vm0, %v759_v48 }
  0xbf   : > { %v1467_v51 = vpop.f32.mrf.mxu2  ;;  %v1676_v52 = vpop.f32.mrf.mxu3 }
  0xc0   : > { %2641 = vst [vmem:[%s3830_s30 + $0x10] sm:$0xff] %v1467_v51  ;;  %3114 = vmatmul.msk.f32.gmra.mxu1 %vm839_vm0, %v759_v48 }
  0xc1   : > { %2642 = vst [vmem:[%s3830_s30 + $0x18] sm:$0xff] %v1676_v52 }
  0xc3   : > { %v1052_v54 = vpop.f32.mrf.mxu0 }
  0xc4   : > { %3179 = vmatmul.msk.f32.gmra.mxu2 %vm839_vm0, %v760_v53  ;;  %3243 = vmatmul.msk.f32.gmra.mxu3 %vm839_vm0, %v760_v53  ;;  %2643 = vst [vmem:[%s3830_s30 + $0x20] sm:$0xff] %v1052_v54  ;;  %v773_v54 = vld [vmem:[%s3734_s7 + $0xf0] sm:$0xff] }
  0xc5   : > { %v1261_v55 = vpop.f32.mrf.mxu1 }
  0xc6   : > { %2644 = vst [vmem:[%s3830_s30 + $0x28] sm:$0xff] %v1261_v55  ;;  %3051 = vmatmul.msk.f32.gmra.mxu0 %vm839_vm0, %v760_v53 }
  0xc7   : > { %v1470_v56 = vpop.f32.mrf.mxu2  ;;  %v1679_v57 = vpop.f32.mrf.mxu3 }
  0xc8   : > { %2645 = vst [vmem:[%s3830_s30 + $0x30] sm:$0xff] %v1470_v56  ;;  %3115 = vmatmul.msk.f32.gmra.mxu1 %vm839_vm0, %v760_v53 }
  0xc9   : > { %2646 = vst [vmem:[%s3830_s30 + $0x38] sm:$0xff] %v1679_v57 }
  0xcb   : > { %v1055_v59 = vpop.f32.mrf.mxu0 }
  0xcc   : > { %3180 = vmatmul.msk.f32.gmra.mxu2 %vm839_vm0, %v761_v58  ;;  %3244 = vmatmul.msk.f32.gmra.mxu3 %vm839_vm0, %v761_v58  ;;  %2647 = vst [vmem:[%s3830_s30 + $0x40] sm:$0xff] %v1055_v59  ;;  %v774_v59 = vld [vmem:[%s3734_s7 + $0xf8] sm:$0xff] }
  0xcd   : > { %v1264_v60 = vpop.f32.mrf.mxu1 }
  0xce   : > { %2648 = vst [vmem:[%s3830_s30 + $0x48] sm:$0xff] %v1264_v60  ;;  %3052 = vmatmul.msk.f32.gmra.mxu0 %vm839_vm0, %v761_v58 }
  0xcf   : > { %v1473_v61 = vpop.f32.mrf.mxu2  ;;  %v1682_v62 = vpop.f32.mrf.mxu3 }
  0xd0   : > { %2649 = vst [vmem:[%s3830_s30 + $0x50] sm:$0xff] %v1473_v61  ;;  %3116 = vmatmul.msk.f32.gmra.mxu1 %vm839_vm0, %v761_v58 }
  0xd1   : > { %2650 = vst [vmem:[%s3830_s30 + $0x58] sm:$0xff] %v1682_v62 }
  0xd3   : > { %v1058_v0 = vpop.f32.mrf.mxu0 }
  0xd4   : > { %3181 = vmatmul.msk.f32.gmra.mxu2 %vm839_vm0, %v762_v63  ;;  %3245 = vmatmul.msk.f32.gmra.mxu3 %vm839_vm0, %v762_v63  ;;  %2651 = vst [vmem:[%s3830_s30 + $0x60] sm:$0xff] %v1058_v0  ;;  %v775_v0 = vld [vmem:[%s3734_s7 + $0x100] sm:$0xff] }
  0xd5   : > { %v1267_v1 = vpop.f32.mrf.mxu1 }
  0xd6   : > { %2652 = vst [vmem:[%s3830_s30 + $0x68] sm:$0xff] %v1267_v1  ;;  %3053 = vmatmul.msk.f32.gmra.mxu0 %vm839_vm0, %v762_v63 }
  0xd7   : > { %v1476_v2 = vpop.f32.mrf.mxu2  ;;  %v1685_v3 = vpop.f32.mrf.mxu3 }
  0xd8   : > { %2653 = vst [vmem:[%s3830_s30 + $0x70] sm:$0xff] %v1476_v2  ;;  %3117 = vmatmul.msk.f32.gmra.mxu1 %vm839_vm0, %v762_v63 }
  0xd9   : > { %2654 = vst [vmem:[%s3830_s30 + $0x78] sm:$0xff] %v1685_v3 }
  0xdb   : > { %v1061_v5 = vpop.f32.mrf.mxu0 }
  0xdc   : > { %3182 = vmatmul.msk.f32.gmra.mxu2 %vm839_vm0, %v763_v4  ;;  %3246 = vmatmul.msk.f32.gmra.mxu3 %vm839_vm0, %v763_v4  ;;  %2655 = vst [vmem:[%s3830_s30 + $0x80] sm:$0xff] %v1061_v5  ;;  %v776_v5 = vld [vmem:[%s3734_s7 + $0x108] sm:$0xff] }
  0xdd   : > { %v1270_v6 = vpop.f32.mrf.mxu1 }
  0xde   : > { %2656 = vst [vmem:[%s3830_s30 + $0x88] sm:$0xff] %v1270_v6  ;;  %3054 = vmatmul.msk.f32.gmra.mxu0 %vm839_vm0, %v763_v4 }
  0xdf   : > { %v1479_v7 = vpop.f32.mrf.mxu2  ;;  %v1688_v8 = vpop.f32.mrf.mxu3 }
  0xe0   : > { %2657 = vst [vmem:[%s3830_s30 + $0x90] sm:$0xff] %v1479_v7  ;;  %3118 = vmatmul.msk.f32.gmra.mxu1 %vm839_vm0, %v763_v4 }
  0xe1   : > { %2658 = vst [vmem:[%s3830_s30 + $0x98] sm:$0xff] %v1688_v8 }
  0xe3   : > { %v1064_v10 = vpop.f32.mrf.mxu0 }
  0xe4   : > { %3183 = vmatmul.msk.f32.gmra.mxu2 %vm839_vm0, %v764_v9  ;;  %3247 = vmatmul.msk.f32.gmra.mxu3 %vm839_vm0, %v764_v9  ;;  %2659 = vst [vmem:[%s3830_s30 + $0xa0] sm:$0xff] %v1064_v10  ;;  %v777_v10 = vld [vmem:[%s3734_s7 + $0x110] sm:$0xff] }
  0xe5   : > { %v1273_v11 = vpop.f32.mrf.mxu1 }
  0xe6   : > { %2660 = vst [vmem:[%s3830_s30 + $0xa8] sm:$0xff] %v1273_v11  ;;  %3055 = vmatmul.msk.f32.gmra.mxu0 %vm839_vm0, %v764_v9 }
  0xe7   : > { %v1482_v12 = vpop.f32.mrf.mxu2  ;;  %v1691_v13 = vpop.f32.mrf.mxu3 }
  0xe8   : > { %2661 = vst [vmem:[%s3830_s30 + $0xb0] sm:$0xff] %v1482_v12  ;;  %3119 = vmatmul.msk.f32.gmra.mxu1 %vm839_vm0, %v764_v9 }
  0xe9   : > { %2662 = vst [vmem:[%s3830_s30 + $0xb8] sm:$0xff] %v1691_v13 }
  0xeb   : > { %v1067_v15 = vpop.f32.mrf.mxu0 }
  0xec   : > { %3184 = vmatmul.msk.f32.gmra.mxu2 %vm839_vm0, %v765_v14  ;;  %3248 = vmatmul.msk.f32.gmra.mxu3 %vm839_vm0, %v765_v14  ;;  %2663 = vst [vmem:[%s3830_s30 + $0xc0] sm:$0xff] %v1067_v15  ;;  %v778_v15 = vld [vmem:[%s3734_s7 + $0x118] sm:$0xff] }
  0xed   : > { %v1276_v16 = vpop.f32.mrf.mxu1 }
  0xee   : > { %2664 = vst [vmem:[%s3830_s30 + $0xc8] sm:$0xff] %v1276_v16  ;;  %3056 = vmatmul.msk.f32.gmra.mxu0 %vm839_vm0, %v765_v14 }
  0xef   : > { %v1485_v17 = vpop.f32.mrf.mxu2  ;;  %v1694_v18 = vpop.f32.mrf.mxu3 }
  0xf0   : > { %2665 = vst [vmem:[%s3830_s30 + $0xd0] sm:$0xff] %v1485_v17  ;;  %3120 = vmatmul.msk.f32.gmra.mxu1 %vm839_vm0, %v765_v14 }
  0xf1   : > { %2666 = vst [vmem:[%s3830_s30 + $0xd8] sm:$0xff] %v1694_v18 }
  0xf3   : > { %v1070_v20 = vpop.f32.mrf.mxu0 }
  0xf4   : > { %3185 = vmatmul.msk.f32.gmra.mxu2 %vm839_vm0, %v766_v19  ;;  %3249 = vmatmul.msk.f32.gmra.mxu3 %vm839_vm0, %v766_v19  ;;  %2667 = vst [vmem:[%s3830_s30 + $0xe0] sm:$0xff] %v1070_v20  ;;  %v779_v20 = vld [vmem:[%s3734_s7 + $0x120] sm:$0xff] }
  0xf5   : > { %v1279_v21 = vpop.f32.mrf.mxu1 }
  0xf6   : > { %2668 = vst [vmem:[%s3830_s30 + $0xe8] sm:$0xff] %v1279_v21  ;;  %3057 = vmatmul.msk.f32.gmra.mxu0 %vm839_vm0, %v766_v19 }
  0xf7   : > { %v1488_v22 = vpop.f32.mrf.mxu2  ;;  %v1697_v23 = vpop.f32.mrf.mxu3 }
  0xf8   : > { %2669 = vst [vmem:[%s3830_s30 + $0xf0] sm:$0xff] %v1488_v22  ;;  %3121 = vmatmul.msk.f32.gmra.mxu1 %vm839_vm0, %v766_v19 }
  0xf9   : > { %2670 = vst [vmem:[%s3830_s30 + $0xf8] sm:$0xff] %v1697_v23 }
  0xfb   : > { %v1073_v25 = vpop.f32.mrf.mxu0 }
  0xfc   : > { %3186 = vmatmul.msk.f32.gmra.mxu2 %vm839_vm0, %v767_v24  ;;  %3250 = vmatmul.msk.f32.gmra.mxu3 %vm839_vm0, %v767_v24  ;;  %2671 = vst [vmem:[%s3830_s30 + $0x100] sm:$0xff] %v1073_v25  ;;  %v780_v25 = vld [vmem:[%s3734_s7 + $0x128] sm:$0xff] }
  0xfd   : > { %v1282_v26 = vpop.f32.mrf.mxu1 }
  0xfe   : > { %2672 = vst [vmem:[%s3830_s30 + $0x108] sm:$0xff] %v1282_v26  ;;  %3058 = vmatmul.msk.f32.gmra.mxu0 %vm839_vm0, %v767_v24 }
  0xff   : > { %v1491_v27 = vpop.f32.mrf.mxu2  ;;  %v1700_v28 = vpop.f32.mrf.mxu3 }
 0x100   : > { %2673 = vst [vmem:[%s3830_s30 + $0x110] sm:$0xff] %v1491_v27  ;;  %3122 = vmatmul.msk.f32.gmra.mxu1 %vm839_vm0, %v767_v24 }
 0x101   : > { %2674 = vst [vmem:[%s3830_s30 + $0x118] sm:$0xff] %v1700_v28 }
 0x103   : > { %v1076_v30 = vpop.f32.mrf.mxu0 }
 0x104   : > { %3187 = vmatmul.msk.f32.gmra.mxu2 %vm839_vm0, %v768_v29  ;;  %3251 = vmatmul.msk.f32.gmra.mxu3 %vm839_vm0, %v768_v29  ;;  %2675 = vst [vmem:[%s3830_s30 + $0x120] sm:$0xff] %v1076_v30  ;;  %v781_v30 = vld [vmem:[%s3734_s7 + $0x130] sm:$0xff] }
 0x105   : > { %v1285_v31 = vpop.f32.mrf.mxu1 }
 0x106   : > { %2676 = vst [vmem:[%s3830_s30 + $0x128] sm:$0xff] %v1285_v31  ;;  %3059 = vmatmul.msk.f32.gmra.mxu0 %vm839_vm0, %v768_v29 }
 0x107   : > { %v1494_v32 = vpop.f32.mrf.mxu2  ;;  %v1703_v33 = vpop.f32.mrf.mxu3 }
 0x108   : > { %2677 = vst [vmem:[%s3830_s30 + $0x130] sm:$0xff] %v1494_v32  ;;  %3123 = vmatmul.msk.f32.gmra.mxu1 %vm839_vm0, %v768_v29 }
 0x109   : > { %2678 = vst [vmem:[%s3830_s30 + $0x138] sm:$0xff] %v1703_v33 }
 0x10b   : > { %v1079_v35 = vpop.f32.mrf.mxu0 }
 0x10c   : > { %3188 = vmatmul.msk.f32.gmra.mxu2 %vm839_vm0, %v769_v34  ;;  %3252 = vmatmul.msk.f32.gmra.mxu3 %vm839_vm0, %v769_v34  ;;  %2679 = vst [vmem:[%s3830_s30 + $0x140] sm:$0xff] %v1079_v35  ;;  %v782_v35 = vld [vmem:[%s3734_s7 + $0x138] sm:$0xff] }
 0x10d   : > { %v1288_v36 = vpop.f32.mrf.mxu1 }
 0x10e   : > { %2680 = vst [vmem:[%s3830_s30 + $0x148] sm:$0xff] %v1288_v36  ;;  %3060 = vmatmul.msk.f32.gmra.mxu0 %vm839_vm0, %v769_v34 }
 0x10f   : > { %v1497_v37 = vpop.f32.mrf.mxu2  ;;  %v1706_v38 = vpop.f32.mrf.mxu3 }
 0x110   : > { %2681 = vst [vmem:[%s3830_s30 + $0x150] sm:$0xff] %v1497_v37  ;;  %3124 = vmatmul.msk.f32.gmra.mxu1 %vm839_vm0, %v769_v34 }
 0x111   : > { %2682 = vst [vmem:[%s3830_s30 + $0x158] sm:$0xff] %v1706_v38 }
 0x113   : > { %v1082_v40 = vpop.f32.mrf.mxu0 }
 0x114   : > { %3189 = vmatmul.msk.f32.gmra.mxu2 %vm839_vm0, %v770_v39  ;;  %3253 = vmatmul.msk.f32.gmra.mxu3 %vm839_vm0, %v770_v39  ;;  %2683 = vst [vmem:[%s3830_s30 + $0x160] sm:$0xff] %v1082_v40  ;;  %v783_v40 = vld [vmem:[%s3734_s7 + $0x140] sm:$0xff] }
 0x115   : > { %v1291_v41 = vpop.f32.mrf.mxu1 }
 0x116   : > { %2684 = vst [vmem:[%s3830_s30 + $0x168] sm:$0xff] %v1291_v41  ;;  %3061 = vmatmul.msk.f32.gmra.mxu0 %vm839_vm0, %v770_v39 }
 0x117   : > { %v1500_v42 = vpop.f32.mrf.mxu2  ;;  %v1709_v43 = vpop.f32.mrf.mxu3 }
 0x118   : > { %2685 = vst [vmem:[%s3830_s30 + $0x170] sm:$0xff] %v1500_v42  ;;  %3125 = vmatmul.msk.f32.gmra.mxu1 %vm839_vm0, %v770_v39 }
 0x119   : > { %2686 = vst [vmem:[%s3830_s30 + $0x178] sm:$0xff] %v1709_v43 }
 0x11b   : > { %v1085_v45 = vpop.f32.mrf.mxu0 }
 0x11c   : > { %3190 = vmatmul.msk.f32.gmra.mxu2 %vm839_vm0, %v771_v44  ;;  %3254 = vmatmul.msk.f32.gmra.mxu3 %vm839_vm0, %v771_v44  ;;  %2687 = vst [vmem:[%s3830_s30 + $0x180] sm:$0xff] %v1085_v45  ;;  %v784_v45 = vld [vmem:[%s3734_s7 + $0x148] sm:$0xff] }
 0x11d   : > { %v1294_v46 = vpop.f32.mrf.mxu1 }
 0x11e   : > { %2688 = vst [vmem:[%s3830_s30 + $0x188] sm:$0xff] %v1294_v46  ;;  %3062 = vmatmul.msk.f32.gmra.mxu0 %vm839_vm0, %v771_v44 }
 0x11f   : > { %v1503_v47 = vpop.f32.mrf.mxu2  ;;  %v1712_v48 = vpop.f32.mrf.mxu3 }
 0x120   : > { %2689 = vst [vmem:[%s3830_s30 + $0x190] sm:$0xff] %v1503_v47  ;;  %3126 = vmatmul.msk.f32.gmra.mxu1 %vm839_vm0, %v771_v44 }
 0x121   : > { %2690 = vst [vmem:[%s3830_s30 + $0x198] sm:$0xff] %v1712_v48 }
 0x123   : > { %v1088_v50 = vpop.f32.mrf.mxu0 }
 0x124   : > { %3191 = vmatmul.msk.f32.gmra.mxu2 %vm839_vm0, %v772_v49  ;;  %3255 = vmatmul.msk.f32.gmra.mxu3 %vm839_vm0, %v772_v49  ;;  %2691 = vst [vmem:[%s3830_s30 + $0x1a0] sm:$0xff] %v1088_v50  ;;  %v785_v50 = vld [vmem:[%s3734_s7 + $0x150] sm:$0xff] }
 0x125   : > { %v1297_v51 = vpop.f32.mrf.mxu1 }
 0x126   : > { %2692 = vst [vmem:[%s3830_s30 + $0x1a8] sm:$0xff] %v1297_v51  ;;  %3063 = vmatmul.msk.f32.gmra.mxu0 %vm839_vm0, %v772_v49 }
 0x127   : > { %v1506_v52 = vpop.f32.mrf.mxu2  ;;  %v1715_v53 = vpop.f32.mrf.mxu3 }
 0x128   : > { %2693 = vst [vmem:[%s3830_s30 + $0x1b0] sm:$0xff] %v1506_v52  ;;  %3127 = vmatmul.msk.f32.gmra.mxu1 %vm839_vm0, %v772_v49 }
 0x129   : > { %2694 = vst [vmem:[%s3830_s30 + $0x1b8] sm:$0xff] %v1715_v53 }
 0x12b   : > { %v1091_v55 = vpop.f32.mrf.mxu0 }
 0x12c   : > { %3192 = vmatmul.msk.f32.gmra.mxu2 %vm839_vm0, %v773_v54  ;;  %3256 = vmatmul.msk.f32.gmra.mxu3 %vm839_vm0, %v773_v54  ;;  %2695 = vst [vmem:[%s3830_s30 + $0x1c0] sm:$0xff] %v1091_v55  ;;  %v786_v55 = vld [vmem:[%s3734_s7 + $0x158] sm:$0xff] }
 0x12d   : > { %v1300_v56 = vpop.f32.mrf.mxu1 }
 0x12e   : > { %2696 = vst [vmem:[%s3830_s30 + $0x1c8] sm:$0xff] %v1300_v56  ;;  %3064 = vmatmul.msk.f32.gmra.mxu0 %vm839_vm0, %v773_v54 }
 0x12f   : > { %v1509_v57 = vpop.f32.mrf.mxu2  ;;  %v1718_v58 = vpop.f32.mrf.mxu3 }
 0x130   : > { %2697 = vst [vmem:[%s3830_s30 + $0x1d0] sm:$0xff] %v1509_v57  ;;  %3128 = vmatmul.msk.f32.gmra.mxu1 %vm839_vm0, %v773_v54 }
 0x131   : > { %2698 = vst [vmem:[%s3830_s30 + $0x1d8] sm:$0xff] %v1718_v58 }
 0x133   : > { %v1094_v60 = vpop.f32.mrf.mxu0 }
 0x134   : > { %3193 = vmatmul.msk.f32.gmra.mxu2 %vm839_vm0, %v774_v59  ;;  %3257 = vmatmul.msk.f32.gmra.mxu3 %vm839_vm0, %v774_v59  ;;  %2699 = vst [vmem:[%s3830_s30 + $0x1e0] sm:$0xff] %v1094_v60  ;;  %v787_v60 = vld [vmem:[%s3734_s7 + $0x160] sm:$0xff] }
 0x135   : > { %v1303_v61 = vpop.f32.mrf.mxu1 }
 0x136   : > { %2700 = vst [vmem:[%s3830_s30 + $0x1e8] sm:$0xff] %v1303_v61  ;;  %3065 = vmatmul.msk.f32.gmra.mxu0 %vm839_vm0, %v774_v59 }
 0x137   : > { %v1512_v62 = vpop.f32.mrf.mxu2  ;;  %v1721_v63 = vpop.f32.mrf.mxu3 }
 0x138   : > { %2701 = vst [vmem:[%s3830_s30 + $0x1f0] sm:$0xff] %v1512_v62  ;;  %3129 = vmatmul.msk.f32.gmra.mxu1 %vm839_vm0, %v774_v59 }
 0x139   : > { %2702 = vst [vmem:[%s3830_s30 + $0x1f8] sm:$0xff] %v1721_v63 }
 0x13b   : > { %v1097_v1 = vpop.f32.mrf.mxu0 }
 0x13c   : > { %3194 = vmatmul.msk.f32.gmra.mxu2 %vm839_vm0, %v775_v0  ;;  %3258 = vmatmul.msk.f32.gmra.mxu3 %vm839_vm0, %v775_v0  ;;  %2703 = vst [vmem:[%s3830_s30 + $0x200] sm:$0xff] %v1097_v1  ;;  %v788_v1 = vld [vmem:[%s3734_s7 + $0x168] sm:$0xff] }
 0x13d   : > { %v1306_v2 = vpop.f32.mrf.mxu1 }
 0x13e   : > { %2704 = vst [vmem:[%s3830_s30 + $0x208] sm:$0xff] %v1306_v2  ;;  %3066 = vmatmul.msk.f32.gmra.mxu0 %vm839_vm0, %v775_v0 }
 0x13f   : > { %v1515_v3 = vpop.f32.mrf.mxu2  ;;  %v1724_v4 = vpop.f32.mrf.mxu3 }
 0x140   : > { %2705 = vst [vmem:[%s3830_s30 + $0x210] sm:$0xff] %v1515_v3  ;;  %3130 = vmatmul.msk.f32.gmra.mxu1 %vm839_vm0, %v775_v0 }
 0x141   : > { %2706 = vst [vmem:[%s3830_s30 + $0x218] sm:$0xff] %v1724_v4 }
 0x143   : > { %v1100_v6 = vpop.f32.mrf.mxu0 }
 0x144   : > { %3195 = vmatmul.msk.f32.gmra.mxu2 %vm839_vm0, %v776_v5  ;;  %3259 = vmatmul.msk.f32.gmra.mxu3 %vm839_vm0, %v776_v5  ;;  %2707 = vst [vmem:[%s3830_s30 + $0x220] sm:$0xff] %v1100_v6  ;;  %v789_v6 = vld [vmem:[%s3734_s7 + $0x170] sm:$0xff] }
 0x145   : > { %v1309_v7 = vpop.f32.mrf.mxu1 }
 0x146   : > { %2708 = vst [vmem:[%s3830_s30 + $0x228] sm:$0xff] %v1309_v7  ;;  %3067 = vmatmul.msk.f32.gmra.mxu0 %vm839_vm0, %v776_v5 }
 0x147   : > { %v1518_v8 = vpop.f32.mrf.mxu2  ;;  %v1727_v9 = vpop.f32.mrf.mxu3 }
 0x148   : > { %2709 = vst [vmem:[%s3830_s30 + $0x230] sm:$0xff] %v1518_v8  ;;  %3131 = vmatmul.msk.f32.gmra.mxu1 %vm839_vm0, %v776_v5 }
 0x149   : > { %2710 = vst [vmem:[%s3830_s30 + $0x238] sm:$0xff] %v1727_v9 }
 0x14b   : > { %v1103_v11 = vpop.f32.mrf.mxu0 }
 0x14c   : > { %3196 = vmatmul.msk.f32.gmra.mxu2 %vm839_vm0, %v777_v10  ;;  %3260 = vmatmul.msk.f32.gmra.mxu3 %vm839_vm0, %v777_v10  ;;  %2711 = vst [vmem:[%s3830_s30 + $0x240] sm:$0xff] %v1103_v11  ;;  %v790_v11 = vld [vmem:[%s3734_s7 + $0x178] sm:$0xff] }
 0x14d   : > { %v1312_v12 = vpop.f32.mrf.mxu1 }
 0x14e   : > { %2712 = vst [vmem:[%s3830_s30 + $0x248] sm:$0xff] %v1312_v12  ;;  %3068 = vmatmul.msk.f32.gmra.mxu0 %vm839_vm0, %v777_v10 }
 0x14f   : > { %v1521_v13 = vpop.f32.mrf.mxu2  ;;  %v1730_v14 = vpop.f32.mrf.mxu3 }
 0x150   : > { %2713 = vst [vmem:[%s3830_s30 + $0x250] sm:$0xff] %v1521_v13  ;;  %3132 = vmatmul.msk.f32.gmra.mxu1 %vm839_vm0, %v777_v10 }
 0x151   : > { %2714 = vst [vmem:[%s3830_s30 + $0x258] sm:$0xff] %v1730_v14 }
 0x153   : > { %v1106_v16 = vpop.f32.mrf.mxu0 }
 0x154   : > { %3197 = vmatmul.msk.f32.gmra.mxu2 %vm839_vm0, %v778_v15  ;;  %3261 = vmatmul.msk.f32.gmra.mxu3 %vm839_vm0, %v778_v15  ;;  %2715 = vst [vmem:[%s3830_s30 + $0x260] sm:$0xff] %v1106_v16  ;;  %v791_v16 = vld [vmem:[%s3734_s7 + $0x180] sm:$0xff] }
 0x155   : > { %v1315_v17 = vpop.f32.mrf.mxu1 }
 0x156   : > { %2716 = vst [vmem:[%s3830_s30 + $0x268] sm:$0xff] %v1315_v17  ;;  %3069 = vmatmul.msk.f32.gmra.mxu0 %vm839_vm0, %v778_v15 }
 0x157   : > { %v1524_v18 = vpop.f32.mrf.mxu2  ;;  %v1733_v19 = vpop.f32.mrf.mxu3 }
 0x158   : > { %2717 = vst [vmem:[%s3830_s30 + $0x270] sm:$0xff] %v1524_v18  ;;  %3133 = vmatmul.msk.f32.gmra.mxu1 %vm839_vm0, %v778_v15 }
 0x159   : > { %2718 = vst [vmem:[%s3830_s30 + $0x278] sm:$0xff] %v1733_v19 }
 0x15b   : > { %v1109_v21 = vpop.f32.mrf.mxu0 }
 0x15c   : > { %3198 = vmatmul.msk.f32.gmra.mxu2 %vm839_vm0, %v779_v20  ;;  %3262 = vmatmul.msk.f32.gmra.mxu3 %vm839_vm0, %v779_v20  ;;  %2719 = vst [vmem:[%s3830_s30 + $0x280] sm:$0xff] %v1109_v21  ;;  %v792_v21 = vld [vmem:[%s3734_s7 + $0x188] sm:$0xff] }
 0x15d   : > { %v1318_v22 = vpop.f32.mrf.mxu1 }
 0x15e   : > { %2720 = vst [vmem:[%s3830_s30 + $0x288] sm:$0xff] %v1318_v22  ;;  %3070 = vmatmul.msk.f32.gmra.mxu0 %vm839_vm0, %v779_v20 }
 0x15f   : > { %v1527_v23 = vpop.f32.mrf.mxu2  ;;  %v1736_v24 = vpop.f32.mrf.mxu3 }
 0x160   : > { %2721 = vst [vmem:[%s3830_s30 + $0x290] sm:$0xff] %v1527_v23  ;;  %3134 = vmatmul.msk.f32.gmra.mxu1 %vm839_vm0, %v779_v20 }
 0x161   : > { %2722 = vst [vmem:[%s3830_s30 + $0x298] sm:$0xff] %v1736_v24 }
 0x163   : > { %v1112_v26 = vpop.f32.mrf.mxu0 }
 0x164   : > { %3199 = vmatmul.msk.f32.gmra.mxu2 %vm839_vm0, %v780_v25  ;;  %3263 = vmatmul.msk.f32.gmra.mxu3 %vm839_vm0, %v780_v25  ;;  %2723 = vst [vmem:[%s3830_s30 + $0x2a0] sm:$0xff] %v1112_v26  ;;  %v793_v26 = vld [vmem:[%s3734_s7 + $0x190] sm:$0xff] }
 0x165   : > { %v1321_v27 = vpop.f32.mrf.mxu1 }
 0x166   : > { %2724 = vst [vmem:[%s3830_s30 + $0x2a8] sm:$0xff] %v1321_v27  ;;  %3071 = vmatmul.msk.f32.gmra.mxu0 %vm839_vm0, %v780_v25 }
 0x167   : > { %v1530_v28 = vpop.f32.mrf.mxu2  ;;  %v1739_v29 = vpop.f32.mrf.mxu3 }
 0x168   : > { %2725 = vst [vmem:[%s3830_s30 + $0x2b0] sm:$0xff] %v1530_v28  ;;  %3135 = vmatmul.msk.f32.gmra.mxu1 %vm839_vm0, %v780_v25 }
 0x169   : > { %2726 = vst [vmem:[%s3830_s30 + $0x2b8] sm:$0xff] %v1739_v29 }
 0x16b   : > { %v1115_v31 = vpop.f32.mrf.mxu0 }
 0x16c   : > { %3200 = vmatmul.msk.f32.gmra.mxu2 %vm839_vm0, %v781_v30  ;;  %3264 = vmatmul.msk.f32.gmra.mxu3 %vm839_vm0, %v781_v30  ;;  %2727 = vst [vmem:[%s3830_s30 + $0x2c0] sm:$0xff] %v1115_v31  ;;  %v794_v31 = vld [vmem:[%s3734_s7 + $0x198] sm:$0xff] }
 0x16d   : > { %v1324_v32 = vpop.f32.mrf.mxu1 }
 0x16e   : > { %2728 = vst [vmem:[%s3830_s30 + $0x2c8] sm:$0xff] %v1324_v32  ;;  %3072 = vmatmul.msk.f32.gmra.mxu0 %vm839_vm0, %v781_v30 }
 0x16f   : > { %v1533_v33 = vpop.f32.mrf.mxu2  ;;  %v1742_v34 = vpop.f32.mrf.mxu3 }
 0x170   : > { %2729 = vst [vmem:[%s3830_s30 + $0x2d0] sm:$0xff] %v1533_v33  ;;  %3136 = vmatmul.msk.f32.gmra.mxu1 %vm839_vm0, %v781_v30 }
 0x171   : > { %2730 = vst [vmem:[%s3830_s30 + $0x2d8] sm:$0xff] %v1742_v34 }
 0x173   : > { %v1118_v36 = vpop.f32.mrf.mxu0 }
 0x174   : > { %3201 = vmatmul.msk.f32.gmra.mxu2 %vm839_vm0, %v782_v35  ;;  %3265 = vmatmul.msk.f32.gmra.mxu3 %vm839_vm0, %v782_v35  ;;  %2731 = vst [vmem:[%s3830_s30 + $0x2e0] sm:$0xff] %v1118_v36  ;;  %v795_v36 = vld [vmem:[%s3734_s7 + $0x1a0] sm:$0xff] }
 0x175   : > { %v1327_v37 = vpop.f32.mrf.mxu1 }
 0x176   : > { %2732 = vst [vmem:[%s3830_s30 + $0x2e8] sm:$0xff] %v1327_v37  ;;  %3073 = vmatmul.msk.f32.gmra.mxu0 %vm839_vm0, %v782_v35 }
 0x177   : > { %v1536_v38 = vpop.f32.mrf.mxu2  ;;  %v1745_v39 = vpop.f32.mrf.mxu3 }
 0x178   : > { %2733 = vst [vmem:[%s3830_s30 + $0x2f0] sm:$0xff] %v1536_v38  ;;  %3137 = vmatmul.msk.f32.gmra.mxu1 %vm839_vm0, %v782_v35 }
 0x179   : > { %2734 = vst [vmem:[%s3830_s30 + $0x2f8] sm:$0xff] %v1745_v39 }
 0x17b   : > { %v1121_v41 = vpop.f32.mrf.mxu0 }
 0x17c   : > { %3202 = vmatmul.msk.f32.gmra.mxu2 %vm839_vm0, %v783_v40  ;;  %3266 = vmatmul.msk.f32.gmra.mxu3 %vm839_vm0, %v783_v40  ;;  %2735 = vst [vmem:[%s3830_s30 + $0x300] sm:$0xff] %v1121_v41  ;;  %v796_v41 = vld [vmem:[%s3734_s7 + $0x1a8] sm:$0xff] }
 0x17d   : > { %v1330_v42 = vpop.f32.mrf.mxu1 }
 0x17e   : > { %2736 = vst [vmem:[%s3830_s30 + $0x308] sm:$0xff] %v1330_v42  ;;  %3074 = vmatmul.msk.f32.gmra.mxu0 %vm839_vm0, %v783_v40 }
 0x17f   : > { %v1539_v43 = vpop.f32.mrf.mxu2  ;;  %v1748_v44 = vpop.f32.mrf.mxu3 }
 0x180   : > { %2737 = vst [vmem:[%s3830_s30 + $0x310] sm:$0xff] %v1539_v43  ;;  %3138 = vmatmul.msk.f32.gmra.mxu1 %vm839_vm0, %v783_v40 }
 0x181   : > { %2738 = vst [vmem:[%s3830_s30 + $0x318] sm:$0xff] %v1748_v44 }
 0x183   : > { %v1124_v46 = vpop.f32.mrf.mxu0 }
 0x184   : > { %3203 = vmatmul.msk.f32.gmra.mxu2 %vm839_vm0, %v784_v45  ;;  %3267 = vmatmul.msk.f32.gmra.mxu3 %vm839_vm0, %v784_v45  ;;  %2739 = vst [vmem:[%s3830_s30 + $0x320] sm:$0xff] %v1124_v46  ;;  %v797_v46 = vld [vmem:[%s3734_s7 + $0x1b0] sm:$0xff] }
 0x185   : > { %v1333_v47 = vpop.f32.mrf.mxu1 }
 0x186   : > { %2740 = vst [vmem:[%s3830_s30 + $0x328] sm:$0xff] %v1333_v47  ;;  %3075 = vmatmul.msk.f32.gmra.mxu0 %vm839_vm0, %v784_v45 }
 0x187   : > { %v1542_v48 = vpop.f32.mrf.mxu2  ;;  %v1751_v49 = vpop.f32.mrf.mxu3 }
 0x188   : > { %2741 = vst [vmem:[%s3830_s30 + $0x330] sm:$0xff] %v1542_v48  ;;  %3139 = vmatmul.msk.f32.gmra.mxu1 %vm839_vm0, %v784_v45 }
 0x189   : > { %2742 = vst [vmem:[%s3830_s30 + $0x338] sm:$0xff] %v1751_v49 }
 0x18b   : > { %v1127_v51 = vpop.f32.mrf.mxu0 }
 0x18c   : > { %3204 = vmatmul.msk.f32.gmra.mxu2 %vm839_vm0, %v785_v50  ;;  %3268 = vmatmul.msk.f32.gmra.mxu3 %vm839_vm0, %v785_v50  ;;  %2743 = vst [vmem:[%s3830_s30 + $0x340] sm:$0xff] %v1127_v51  ;;  %v798_v51 = vld [vmem:[%s3734_s7 + $0x1b8] sm:$0xff] }
 0x18d   : > { %v1336_v52 = vpop.f32.mrf.mxu1 }
 0x18e   : > { %2744 = vst [vmem:[%s3830_s30 + $0x348] sm:$0xff] %v1336_v52  ;;  %3076 = vmatmul.msk.f32.gmra.mxu0 %vm839_vm0, %v785_v50 }
 0x18f   : > { %v1545_v53 = vpop.f32.mrf.mxu2  ;;  %v1754_v54 = vpop.f32.mrf.mxu3 }
 0x190   : > { %2745 = vst [vmem:[%s3830_s30 + $0x350] sm:$0xff] %v1545_v53  ;;  %3140 = vmatmul.msk.f32.gmra.mxu1 %vm839_vm0, %v785_v50 }
 0x191   : > { %2746 = vst [vmem:[%s3830_s30 + $0x358] sm:$0xff] %v1754_v54 }
 0x193   : > { %v1130_v56 = vpop.f32.mrf.mxu0 }
 0x194   : > { %3205 = vmatmul.msk.f32.gmra.mxu2 %vm839_vm0, %v786_v55  ;;  %3269 = vmatmul.msk.f32.gmra.mxu3 %vm839_vm0, %v786_v55  ;;  %2747 = vst [vmem:[%s3830_s30 + $0x360] sm:$0xff] %v1130_v56  ;;  %v799_v56 = vld [vmem:[%s3734_s7 + $0x1c0] sm:$0xff] }
 0x195   : > { %v1339_v57 = vpop.f32.mrf.mxu1 }
 0x196   : > { %2748 = vst [vmem:[%s3830_s30 + $0x368] sm:$0xff] %v1339_v57  ;;  %3077 = vmatmul.msk.f32.gmra.mxu0 %vm839_vm0, %v786_v55 }
 0x197   : > { %v1548_v58 = vpop.f32.mrf.mxu2  ;;  %v1757_v59 = vpop.f32.mrf.mxu3 }
 0x198   : > { %2749 = vst [vmem:[%s3830_s30 + $0x370] sm:$0xff] %v1548_v58  ;;  %3141 = vmatmul.msk.f32.gmra.mxu1 %vm839_vm0, %v786_v55 }
 0x199   : > { %2750 = vst [vmem:[%s3830_s30 + $0x378] sm:$0xff] %v1757_v59 }
 0x19b   : > { %v1133_v61 = vpop.f32.mrf.mxu0 }
 0x19c   : > { %3206 = vmatmul.msk.f32.gmra.mxu2 %vm839_vm0, %v787_v60  ;;  %3270 = vmatmul.msk.f32.gmra.mxu3 %vm839_vm0, %v787_v60  ;;  %2751 = vst [vmem:[%s3830_s30 + $0x380] sm:$0xff] %v1133_v61  ;;  %v800_v61 = vld [vmem:[%s3734_s7 + $0x1c8] sm:$0xff] }
 0x19d   : > { %v1342_v62 = vpop.f32.mrf.mxu1 }
 0x19e   : > { %2752 = vst [vmem:[%s3830_s30 + $0x388] sm:$0xff] %v1342_v62  ;;  %3078 = vmatmul.msk.f32.gmra.mxu0 %vm839_vm0, %v787_v60 }
 0x19f   : > { %v1551_v63 = vpop.f32.mrf.mxu2  ;;  %v1760_v0 = vpop.f32.mrf.mxu3 }
 0x1a0   : > { %2753 = vst [vmem:[%s3830_s30 + $0x390] sm:$0xff] %v1551_v63  ;;  %3142 = vmatmul.msk.f32.gmra.mxu1 %vm839_vm0, %v787_v60 }
 0x1a1   : > { %2754 = vst [vmem:[%s3830_s30 + $0x398] sm:$0xff] %v1760_v0 }
 0x1a3   : > { %v1136_v2 = vpop.f32.mrf.mxu0 }
 0x1a4   : > { %3207 = vmatmul.msk.f32.gmra.mxu2 %vm839_vm0, %v788_v1  ;;  %3271 = vmatmul.msk.f32.gmra.mxu3 %vm839_vm0, %v788_v1  ;;  %2755 = vst [vmem:[%s3830_s30 + $0x3a0] sm:$0xff] %v1136_v2  ;;  %v801_v2 = vld [vmem:[%s3734_s7 + $0x1d0] sm:$0xff] }
 0x1a5   : > { %v1345_v3 = vpop.f32.mrf.mxu1 }
 0x1a6   : > { %2756 = vst [vmem:[%s3830_s30 + $0x3a8] sm:$0xff] %v1345_v3  ;;  %3079 = vmatmul.msk.f32.gmra.mxu0 %vm839_vm0, %v788_v1 }
 0x1a7   : > { %v1554_v4 = vpop.f32.mrf.mxu2  ;;  %v1763_v5 = vpop.f32.mrf.mxu3 }
 0x1a8   : > { %2757 = vst [vmem:[%s3830_s30 + $0x3b0] sm:$0xff] %v1554_v4  ;;  %3143 = vmatmul.msk.f32.gmra.mxu1 %vm839_vm0, %v788_v1 }
 0x1a9   : > { %2758 = vst [vmem:[%s3830_s30 + $0x3b8] sm:$0xff] %v1763_v5 }
 0x1ab   : > { %v1139_v7 = vpop.f32.mrf.mxu0 }
 0x1ac   : > { %3208 = vmatmul.msk.f32.gmra.mxu2 %vm839_vm0, %v789_v6  ;;  %3272 = vmatmul.msk.f32.gmra.mxu3 %vm839_vm0, %v789_v6  ;;  %2759 = vst [vmem:[%s3830_s30 + $0x3c0] sm:$0xff] %v1139_v7  ;;  %v802_v7 = vld [vmem:[%s3734_s7 + $0x1d8] sm:$0xff] }
 0x1ad   : > { %v1348_v8 = vpop.f32.mrf.mxu1 }
 0x1ae   : > { %2760 = vst [vmem:[%s3830_s30 + $0x3c8] sm:$0xff] %v1348_v8  ;;  %3080 = vmatmul.msk.f32.gmra.mxu0 %vm839_vm0, %v789_v6 }
 0x1af   : > { %v1557_v9 = vpop.f32.mrf.mxu2  ;;  %v1766_v10 = vpop.f32.mrf.mxu3 }
 0x1b0   : > { %2761 = vst [vmem:[%s3830_s30 + $0x3d0] sm:$0xff] %v1557_v9  ;;  %3144 = vmatmul.msk.f32.gmra.mxu1 %vm839_vm0, %v789_v6 }
 0x1b1   : > { %2762 = vst [vmem:[%s3830_s30 + $0x3d8] sm:$0xff] %v1766_v10 }
 0x1b3   : > { %v1142_v12 = vpop.f32.mrf.mxu0 }
 0x1b4   : > { %3209 = vmatmul.msk.f32.gmra.mxu2 %vm839_vm0, %v790_v11  ;;  %3273 = vmatmul.msk.f32.gmra.mxu3 %vm839_vm0, %v790_v11  ;;  %2763 = vst [vmem:[%s3830_s30 + $0x3e0] sm:$0xff] %v1142_v12  ;;  %v803_v12 = vld [vmem:[%s3734_s7 + $0x1e0] sm:$0xff] }
 0x1b5   : > { %v1351_v13 = vpop.f32.mrf.mxu1 }
 0x1b6   : > { %2764 = vst [vmem:[%s3830_s30 + $0x3e8] sm:$0xff] %v1351_v13  ;;  %3081 = vmatmul.msk.f32.gmra.mxu0 %vm839_vm0, %v790_v11 }
 0x1b7   : > { %v1560_v14 = vpop.f32.mrf.mxu2  ;;  %v1769_v15 = vpop.f32.mrf.mxu3 }
 0x1b8   : > { %2765 = vst [vmem:[%s3830_s30 + $0x3f0] sm:$0xff] %v1560_v14  ;;  %3145 = vmatmul.msk.f32.gmra.mxu1 %vm839_vm0, %v790_v11 }
 0x1b9   : > { %2766 = vst [vmem:[%s3830_s30 + $0x3f8] sm:$0xff] %v1769_v15 }
 0x1bb   : > { %v1145_v17 = vpop.f32.mrf.mxu0 }
 0x1bc   : > { %3210 = vmatmul.msk.f32.gmra.mxu2 %vm839_vm0, %v791_v16  ;;  %3274 = vmatmul.msk.f32.gmra.mxu3 %vm839_vm0, %v791_v16  ;;  %2767 = vst [vmem:[%s3830_s30 + $0x400] sm:$0xff] %v1145_v17  ;;  %v804_v17 = vld [vmem:[%s3734_s7 + $0x1e8] sm:$0xff] }
 0x1bd   : > { %v1354_v18 = vpop.f32.mrf.mxu1 }
 0x1be   : > { %2768 = vst [vmem:[%s3830_s30 + $0x408] sm:$0xff] %v1354_v18  ;;  %3082 = vmatmul.msk.f32.gmra.mxu0 %vm839_vm0, %v791_v16 }
 0x1bf   : > { %v1563_v19 = vpop.f32.mrf.mxu2  ;;  %v1772_v20 = vpop.f32.mrf.mxu3 }
 0x1c0   : > { %2769 = vst [vmem:[%s3830_s30 + $0x410] sm:$0xff] %v1563_v19  ;;  %3146 = vmatmul.msk.f32.gmra.mxu1 %vm839_vm0, %v791_v16 }
 0x1c1   : > { %2770 = vst [vmem:[%s3830_s30 + $0x418] sm:$0xff] %v1772_v20 }
 0x1c3   : > { %v1148_v22 = vpop.f32.mrf.mxu0 }
 0x1c4   : > { %3211 = vmatmul.msk.f32.gmra.mxu2 %vm839_vm0, %v792_v21  ;;  %3275 = vmatmul.msk.f32.gmra.mxu3 %vm839_vm0, %v792_v21  ;;  %2771 = vst [vmem:[%s3830_s30 + $0x420] sm:$0xff] %v1148_v22  ;;  %v805_v22 = vld [vmem:[%s3734_s7 + $0x1f0] sm:$0xff] }
 0x1c5   : > { %v1357_v23 = vpop.f32.mrf.mxu1 }
 0x1c6   : > { %2772 = vst [vmem:[%s3830_s30 + $0x428] sm:$0xff] %v1357_v23  ;;  %3083 = vmatmul.msk.f32.gmra.mxu0 %vm839_vm0, %v792_v21 }
 0x1c7   : > { %v1566_v24 = vpop.f32.mrf.mxu2  ;;  %v1775_v25 = vpop.f32.mrf.mxu3 }
 0x1c8   : > { %2773 = vst [vmem:[%s3830_s30 + $0x430] sm:$0xff] %v1566_v24  ;;  %3147 = vmatmul.msk.f32.gmra.mxu1 %vm839_vm0, %v792_v21 }
 0x1c9   : > { %2774 = vst [vmem:[%s3830_s30 + $0x438] sm:$0xff] %v1775_v25 }
 0x1cb   : > { %v1151_v27 = vpop.f32.mrf.mxu0 }
 0x1cc   : > { %3212 = vmatmul.msk.f32.gmra.mxu2 %vm839_vm0, %v793_v26  ;;  %3276 = vmatmul.msk.f32.gmra.mxu3 %vm839_vm0, %v793_v26  ;;  %2775 = vst [vmem:[%s3830_s30 + $0x440] sm:$0xff] %v1151_v27  ;;  %v806_v27 = vld [vmem:[%s3734_s7 + $0x1f8] sm:$0xff] }
 0x1cd   : > { %v1360_v28 = vpop.f32.mrf.mxu1 }
 0x1ce   : > { %2776 = vst [vmem:[%s3830_s30 + $0x448] sm:$0xff] %v1360_v28  ;;  %3084 = vmatmul.msk.f32.gmra.mxu0 %vm839_vm0, %v793_v26 }
 0x1cf   : > { %v1569_v29 = vpop.f32.mrf.mxu2  ;;  %v1778_v30 = vpop.f32.mrf.mxu3 }
 0x1d0   : > { %2777 = vst [vmem:[%s3830_s30 + $0x450] sm:$0xff] %v1569_v29  ;;  %3148 = vmatmul.msk.f32.gmra.mxu1 %vm839_vm0, %v793_v26 }
 0x1d1   : > { %2778 = vst [vmem:[%s3830_s30 + $0x458] sm:$0xff] %v1778_v30 }
 0x1d3   : > { %v1154_v32 = vpop.f32.mrf.mxu0 }
 0x1d4   : > { %3213 = vmatmul.msk.f32.gmra.mxu2 %vm839_vm0, %v794_v31  ;;  %3277 = vmatmul.msk.f32.gmra.mxu3 %vm839_vm0, %v794_v31  ;;  %2779 = vst [vmem:[%s3830_s30 + $0x460] sm:$0xff] %v1154_v32 }
 0x1d5   : > { %v1363_v33 = vpop.f32.mrf.mxu1 }
 0x1d6   : > { %2780 = vst [vmem:[%s3830_s30 + $0x468] sm:$0xff] %v1363_v33  ;;  %3085 = vmatmul.msk.f32.gmra.mxu0 %vm839_vm0, %v794_v31 }
 0x1d7   : > { %v1572_v34 = vpop.f32.mrf.mxu2  ;;  %v1781_v35 = vpop.f32.mrf.mxu3 }
 0x1d8   : > { %2781 = vst [vmem:[%s3830_s30 + $0x470] sm:$0xff] %v1572_v34  ;;  %3149 = vmatmul.msk.f32.gmra.mxu1 %vm839_vm0, %v794_v31 }
 0x1d9   : > { %2782 = vst [vmem:[%s3830_s30 + $0x478] sm:$0xff] %v1781_v35 }
 0x1db   : > { %v1157_v37 = vpop.f32.mrf.mxu0 }
 0x1dc   : > { %3214 = vmatmul.msk.f32.gmra.mxu2 %vm839_vm0, %v795_v36  ;;  %3278 = vmatmul.msk.f32.gmra.mxu3 %vm839_vm0, %v795_v36  ;;  %2783 = vst [vmem:[%s3830_s30 + $0x480] sm:$0xff] %v1157_v37 }
 0x1dd   : > { %v1366_v38 = vpop.f32.mrf.mxu1 }
 0x1de   : > { %2784 = vst [vmem:[%s3830_s30 + $0x488] sm:$0xff] %v1366_v38  ;;  %3086 = vmatmul.msk.f32.gmra.mxu0 %vm839_vm0, %v795_v36 }
 0x1df   : > { %v1575_v39 = vpop.f32.mrf.mxu2  ;;  %v1784_v40 = vpop.f32.mrf.mxu3 }
 0x1e0   : > { %2785 = vst [vmem:[%s3830_s30 + $0x490] sm:$0xff] %v1575_v39  ;;  %3150 = vmatmul.msk.f32.gmra.mxu1 %vm839_vm0, %v795_v36 }
 0x1e1   : > { %2786 = vst [vmem:[%s3830_s30 + $0x498] sm:$0xff] %v1784_v40 }
 0x1e3   : > { %v1160_v42 = vpop.f32.mrf.mxu0 }
 0x1e4   : > { %3215 = vmatmul.msk.f32.gmra.mxu2 %vm839_vm0, %v796_v41  ;;  %3279 = vmatmul.msk.f32.gmra.mxu3 %vm839_vm0, %v796_v41  ;;  %2787 = vst [vmem:[%s3830_s30 + $0x4a0] sm:$0xff] %v1160_v42 }
 0x1e5   : > { %v1369_v43 = vpop.f32.mrf.mxu1 }
 0x1e6   : > { %2788 = vst [vmem:[%s3830_s30 + $0x4a8] sm:$0xff] %v1369_v43  ;;  %3087 = vmatmul.msk.f32.gmra.mxu0 %vm839_vm0, %v796_v41 }
 0x1e7   : > { %v1578_v44 = vpop.f32.mrf.mxu2  ;;  %v1787_v45 = vpop.f32.mrf.mxu3 }
 0x1e8   : > { %2789 = vst [vmem:[%s3830_s30 + $0x4b0] sm:$0xff] %v1578_v44  ;;  %3151 = vmatmul.msk.f32.gmra.mxu1 %vm839_vm0, %v796_v41 }
 0x1e9   : > { %2790 = vst [vmem:[%s3830_s30 + $0x4b8] sm:$0xff] %v1787_v45 }
 0x1eb   : > { %v1163_v47 = vpop.f32.mrf.mxu0 }
 0x1ec   : > { %3216 = vmatmul.msk.f32.gmra.mxu2 %vm839_vm0, %v797_v46  ;;  %3280 = vmatmul.msk.f32.gmra.mxu3 %vm839_vm0, %v797_v46  ;;  %2791 = vst [vmem:[%s3830_s30 + $0x4c0] sm:$0xff] %v1163_v47 }
 0x1ed   : > { %v1372_v48 = vpop.f32.mrf.mxu1 }
 0x1ee   : > { %2792 = vst [vmem:[%s3830_s30 + $0x4c8] sm:$0xff] %v1372_v48  ;;  %3088 = vmatmul.msk.f32.gmra.mxu0 %vm839_vm0, %v797_v46 }
 0x1ef   : > { %v1581_v49 = vpop.f32.mrf.mxu2  ;;  %v1790_v50 = vpop.f32.mrf.mxu3 }
 0x1f0   : > { %2793 = vst [vmem:[%s3830_s30 + $0x4d0] sm:$0xff] %v1581_v49  ;;  %3152 = vmatmul.msk.f32.gmra.mxu1 %vm839_vm0, %v797_v46 }
 0x1f1   : > { %2794 = vst [vmem:[%s3830_s30 + $0x4d8] sm:$0xff] %v1790_v50 }
 0x1f3   : > { %v1166_v52 = vpop.f32.mrf.mxu0 }
 0x1f4   : > { %3217 = vmatmul.msk.f32.gmra.mxu2 %vm839_vm0, %v798_v51  ;;  %3281 = vmatmul.msk.f32.gmra.mxu3 %vm839_vm0, %v798_v51  ;;  %2795 = vst [vmem:[%s3830_s30 + $0x4e0] sm:$0xff] %v1166_v52 }
 0x1f5   : > { %v1375_v53 = vpop.f32.mrf.mxu1 }
 0x1f6   : > { %2796 = vst [vmem:[%s3830_s30 + $0x4e8] sm:$0xff] %v1375_v53  ;;  %3089 = vmatmul.msk.f32.gmra.mxu0 %vm839_vm0, %v798_v51 }
 0x1f7   : > { %v1584_v54 = vpop.f32.mrf.mxu2  ;;  %v1793_v55 = vpop.f32.mrf.mxu3 }
 0x1f8   : > { %2797 = vst [vmem:[%s3830_s30 + $0x4f0] sm:$0xff] %v1584_v54  ;;  %3153 = vmatmul.msk.f32.gmra.mxu1 %vm839_vm0, %v798_v51 }
 0x1f9   : > { %2798 = vst [vmem:[%s3830_s30 + $0x4f8] sm:$0xff] %v1793_v55 }
 0x1fb   : > { %v1169_v57 = vpop.f32.mrf.mxu0 }
 0x1fc   : > { %3218 = vmatmul.msk.f32.gmra.mxu2 %vm839_vm0, %v799_v56  ;;  %3282 = vmatmul.msk.f32.gmra.mxu3 %vm839_vm0, %v799_v56  ;;  %2799 = vst [vmem:[%s3830_s30 + $0x500] sm:$0xff] %v1169_v57 }
 0x1fd   : > { %v1378_v58 = vpop.f32.mrf.mxu1 }
 0x1fe   : > { %2800 = vst [vmem:[%s3830_s30 + $0x508] sm:$0xff] %v1378_v58  ;;  %3090 = vmatmul.msk.f32.gmra.mxu0 %vm839_vm0, %v799_v56 }
 0x1ff   : > { %v1587_v59 = vpop.f32.mrf.mxu2  ;;  %v1796_v60 = vpop.f32.mrf.mxu3 }
 0x200   : > { %2801 = vst [vmem:[%s3830_s30 + $0x510] sm:$0xff] %v1587_v59  ;;  %3154 = vmatmul.msk.f32.gmra.mxu1 %vm839_vm0, %v799_v56 }
 0x201   : > { %2802 = vst [vmem:[%s3830_s30 + $0x518] sm:$0xff] %v1796_v60 }
 0x203   : > { %v1172_v62 = vpop.f32.mrf.mxu0 }
 0x204   : > { %3219 = vmatmul.msk.f32.gmra.mxu2 %vm839_vm0, %v800_v61  ;;  %3283 = vmatmul.msk.f32.gmra.mxu3 %vm839_vm0, %v800_v61  ;;  %2803 = vst [vmem:[%s3830_s30 + $0x520] sm:$0xff] %v1172_v62 }
 0x205   : > { %v1381_v63 = vpop.f32.mrf.mxu1 }
 0x206   : > { %2804 = vst [vmem:[%s3830_s30 + $0x528] sm:$0xff] %v1381_v63  ;;  %3091 = vmatmul.msk.f32.gmra.mxu0 %vm839_vm0, %v800_v61 }
 0x207   : > { %v1590_v0 = vpop.f32.mrf.mxu2  ;;  %v1799_v1 = vpop.f32.mrf.mxu3 }
 0x208   : > { %2805 = vst [vmem:[%s3830_s30 + $0x530] sm:$0xff] %v1590_v0  ;;  %3155 = vmatmul.msk.f32.gmra.mxu1 %vm839_vm0, %v800_v61 }
 0x209   : > { %2806 = vst [vmem:[%s3830_s30 + $0x538] sm:$0xff] %v1799_v1 }
 0x20b   : > { %v1175_v3 = vpop.f32.mrf.mxu0 }
 0x20c   : > { %3220 = vmatmul.msk.f32.gmra.mxu2 %vm839_vm0, %v801_v2  ;;  %3284 = vmatmul.msk.f32.gmra.mxu3 %vm839_vm0, %v801_v2  ;;  %2807 = vst [vmem:[%s3830_s30 + $0x540] sm:$0xff] %v1175_v3 }
 0x20d   : > { %v1384_v4 = vpop.f32.mrf.mxu1 }
 0x20e   : > { %2808 = vst [vmem:[%s3830_s30 + $0x548] sm:$0xff] %v1384_v4  ;;  %3092 = vmatmul.msk.f32.gmra.mxu0 %vm839_vm0, %v801_v2 }
 0x20f   : > { %v1593_v5 = vpop.f32.mrf.mxu2  ;;  %v1802_v6 = vpop.f32.mrf.mxu3 }
 0x210   : > { %2809 = vst [vmem:[%s3830_s30 + $0x550] sm:$0xff] %v1593_v5  ;;  %3156 = vmatmul.msk.f32.gmra.mxu1 %vm839_vm0, %v801_v2 }
 0x211   : > { %2810 = vst [vmem:[%s3830_s30 + $0x558] sm:$0xff] %v1802_v6 }
 0x213   : > { %v1178_v8 = vpop.f32.mrf.mxu0 }
 0x214   : > { %3221 = vmatmul.msk.f32.gmra.mxu2 %vm839_vm0, %v802_v7  ;;  %3285 = vmatmul.msk.f32.gmra.mxu3 %vm839_vm0, %v802_v7  ;;  %2811 = vst [vmem:[%s3830_s30 + $0x560] sm:$0xff] %v1178_v8 }
 0x215   : > { %v1387_v9 = vpop.f32.mrf.mxu1 }
 0x216   : > { %2812 = vst [vmem:[%s3830_s30 + $0x568] sm:$0xff] %v1387_v9  ;;  %3093 = vmatmul.msk.f32.gmra.mxu0 %vm839_vm0, %v802_v7 }
 0x217   : > { %v1596_v10 = vpop.f32.mrf.mxu2  ;;  %v1805_v11 = vpop.f32.mrf.mxu3 }
 0x218   : > { %2813 = vst [vmem:[%s3830_s30 + $0x570] sm:$0xff] %v1596_v10  ;;  %3157 = vmatmul.msk.f32.gmra.mxu1 %vm839_vm0, %v802_v7 }
 0x219   : > { %2814 = vst [vmem:[%s3830_s30 + $0x578] sm:$0xff] %v1805_v11 }
 0x21b   : > { %v1181_v13 = vpop.f32.mrf.mxu0 }
 0x21c   : > { %3222 = vmatmul.msk.f32.gmra.mxu2 %vm839_vm0, %v803_v12  ;;  %3286 = vmatmul.msk.f32.gmra.mxu3 %vm839_vm0, %v803_v12  ;;  %2815 = vst [vmem:[%s3830_s30 + $0x580] sm:$0xff] %v1181_v13 }
 0x21d   : > { %v1390_v14 = vpop.f32.mrf.mxu1 }
 0x21e   : > { %2816 = vst [vmem:[%s3830_s30 + $0x588] sm:$0xff] %v1390_v14  ;;  %3094 = vmatmul.msk.f32.gmra.mxu0 %vm839_vm0, %v803_v12 }
 0x21f   : > { %v1599_v15 = vpop.f32.mrf.mxu2  ;;  %v1808_v16 = vpop.f32.mrf.mxu3 }
 0x220   : > { %2817 = vst [vmem:[%s3830_s30 + $0x590] sm:$0xff] %v1599_v15  ;;  %3158 = vmatmul.msk.f32.gmra.mxu1 %vm839_vm0, %v803_v12 }
 0x221   : > { %2818 = vst [vmem:[%s3830_s30 + $0x598] sm:$0xff] %v1808_v16 }
 0x223   : > { %v1184_v18 = vpop.f32.mrf.mxu0 }
 0x224   : > { %3223 = vmatmul.msk.f32.gmra.mxu2 %vm839_vm0, %v804_v17  ;;  %3287 = vmatmul.msk.f32.gmra.mxu3 %vm839_vm0, %v804_v17  ;;  %2819 = vst [vmem:[%s3830_s30 + $0x5a0] sm:$0xff] %v1184_v18 }
 0x225   : > { %v1393_v19 = vpop.f32.mrf.mxu1 }
 0x226   : > { %2820 = vst [vmem:[%s3830_s30 + $0x5a8] sm:$0xff] %v1393_v19  ;;  %3095 = vmatmul.msk.f32.gmra.mxu0 %vm839_vm0, %v804_v17 }
 0x227   : > { %v1602_v20 = vpop.f32.mrf.mxu2  ;;  %v1811_v21 = vpop.f32.mrf.mxu3 }
 0x228   : > { %2821 = vst [vmem:[%s3830_s30 + $0x5b0] sm:$0xff] %v1602_v20  ;;  %3159 = vmatmul.msk.f32.gmra.mxu1 %vm839_vm0, %v804_v17 }
 0x229   : > { %2822 = vst [vmem:[%s3830_s30 + $0x5b8] sm:$0xff] %v1811_v21 }
 0x22b   : > { %v1187_v23 = vpop.f32.mrf.mxu0 }
 0x22c   : > { %3224 = vmatmul.msk.f32.gmra.mxu2 %vm839_vm0, %v805_v22  ;;  %3288 = vmatmul.msk.f32.gmra.mxu3 %vm839_vm0, %v805_v22  ;;  %2823 = vst [vmem:[%s3830_s30 + $0x5c0] sm:$0xff] %v1187_v23 }
 0x22d   : > { %v1396_v24 = vpop.f32.mrf.mxu1 }
 0x22e   : > { %2824 = vst [vmem:[%s3830_s30 + $0x5c8] sm:$0xff] %v1396_v24  ;;  %3096 = vmatmul.msk.f32.gmra.mxu0 %vm839_vm0, %v805_v22 }
 0x22f   : > { %v1605_v25 = vpop.f32.mrf.mxu2  ;;  %v1814_v26 = vpop.f32.mrf.mxu3 }
 0x230   : > { %2825 = vst [vmem:[%s3830_s30 + $0x5d0] sm:$0xff] %v1605_v25  ;;  %3160 = vmatmul.msk.f32.gmra.mxu1 %vm839_vm0, %v805_v22 }
 0x231   : > { %2826 = vst [vmem:[%s3830_s30 + $0x5d8] sm:$0xff] %v1814_v26 }
 0x233   : > { %v1190_v28 = vpop.f32.mrf.mxu0 }
 0x234   : > { %3225 = vmatmul.msk.f32.gmra.mxu2 %vm839_vm0, %v806_v27  ;;  %3289 = vmatmul.msk.f32.gmra.mxu3 %vm839_vm0, %v806_v27  ;;  %2827 = vst [vmem:[%s3830_s30 + $0x5e0] sm:$0xff] %v1190_v28 }
 0x235   : > { %v1399_v29 = vpop.f32.mrf.mxu1 }
 0x236   : > { %2828 = vst [vmem:[%s3830_s30 + $0x5e8] sm:$0xff] %v1399_v29  ;;  %3097 = vmatmul.msk.f32.gmra.mxu0 %vm839_vm0, %v806_v27 }
 0x237   : > { %v1608_v30 = vpop.f32.mrf.mxu2  ;;  %v1817_v31 = vpop.f32.mrf.mxu3 }
 0x238   : > { %2829 = vst [vmem:[%s3830_s30 + $0x5f0] sm:$0xff] %v1608_v30  ;;  %3161 = vmatmul.msk.f32.gmra.mxu1 %vm839_vm0, %v806_v27 }
 0x239   : > { %2830 = vst [vmem:[%s3830_s30 + $0x5f8] sm:$0xff] %v1817_v31 }
 0x23b   : > { %v1193_v32 = vpop.f32.mrf.mxu0 }
 0x23c   : > { %2831 = vst [vmem:[%s3830_s30 + $0x600] sm:$0xff] %v1193_v32 }
 0x23d   : > { %v1402_v33 = vpop.f32.mrf.mxu1 }
 0x23e   : > { %2832 = vst [vmem:[%s3830_s30 + $0x608] sm:$0xff] %v1402_v33 }
 0x23f   : > { %v1611_v34 = vpop.f32.mrf.mxu2  ;;  %v1820_v35 = vpop.f32.mrf.mxu3 }
 0x240   : > { %2833 = vst [vmem:[%s3830_s30 + $0x610] sm:$0xff] %v1611_v34 }
 0x241   : > { %2834 = vst [vmem:[%s3830_s30 + $0x618] sm:$0xff] %v1820_v35 }
 0x243   : > { %v1196_v36 = vpop.f32.mrf.mxu0 }
 0x244   : > { %2835 = vst [vmem:[%s3830_s30 + $0x620] sm:$0xff] %v1196_v36 }
 0x245   : > { %v1405_v37 = vpop.f32.mrf.mxu1 }
 0x246   : > { %2836 = vst [vmem:[%s3830_s30 + $0x628] sm:$0xff] %v1405_v37 }
 0x247   : > { %v1614_v38 = vpop.f32.mrf.mxu2  ;;  %v1823_v39 = vpop.f32.mrf.mxu3 }
 0x248   : > { %2837 = vst [vmem:[%s3830_s30 + $0x630] sm:$0xff] %v1614_v38 }
 0x249   : > { %2838 = vst [vmem:[%s3830_s30 + $0x638] sm:$0xff] %v1823_v39 }
 0x24b   : > { %v1199_v40 = vpop.f32.mrf.mxu0 }
 0x24c   : > { %2839 = vst [vmem:[%s3830_s30 + $0x640] sm:$0xff] %v1199_v40 }
 0x24d   : > { %v1408_v41 = vpop.f32.mrf.mxu1 }
 0x24e   : > { %2840 = vst [vmem:[%s3830_s30 + $0x648] sm:$0xff] %v1408_v41 }
 0x24f   : > { %v1617_v42 = vpop.f32.mrf.mxu2  ;;  %v1826_v43 = vpop.f32.mrf.mxu3 }
 0x250   : > { %2841 = vst [vmem:[%s3830_s30 + $0x650] sm:$0xff] %v1617_v42 }
 0x251   : > { %2842 = vst [vmem:[%s3830_s30 + $0x658] sm:$0xff] %v1826_v43 }
 0x253   : > { %v1202_v44 = vpop.f32.mrf.mxu0 }
 0x254   : > { %2843 = vst [vmem:[%s3830_s30 + $0x660] sm:$0xff] %v1202_v44 }
 0x255   : > { %v1411_v45 = vpop.f32.mrf.mxu1 }
 0x256   : > { %2844 = vst [vmem:[%s3830_s30 + $0x668] sm:$0xff] %v1411_v45 }
 0x257   : > { %v1620_v46 = vpop.f32.mrf.mxu2  ;;  %v1829_v47 = vpop.f32.mrf.mxu3 }
 0x258   : > { %2845 = vst [vmem:[%s3830_s30 + $0x670] sm:$0xff] %v1620_v46 }
 0x259   : > { %2846 = vst [vmem:[%s3830_s30 + $0x678] sm:$0xff] %v1829_v47 }
 0x25b   : > { %v1205_v48 = vpop.f32.mrf.mxu0 }
 0x25c   : > { %2847 = vst [vmem:[%s3830_s30 + $0x680] sm:$0xff] %v1205_v48 }
 0x25d   : > { %v1414_v49 = vpop.f32.mrf.mxu1 }
 0x25e   : > { %2848 = vst [vmem:[%s3830_s30 + $0x688] sm:$0xff] %v1414_v49 }
 0x25f   : > { %v1623_v50 = vpop.f32.mrf.mxu2  ;;  %v1832_v51 = vpop.f32.mrf.mxu3 }
 0x260   : > { %2849 = vst [vmem:[%s3830_s30 + $0x690] sm:$0xff] %v1623_v50 }
 0x261   : > { %2850 = vst [vmem:[%s3830_s30 + $0x698] sm:$0xff] %v1832_v51 }
 0x263   : > { %v1208_v52 = vpop.f32.mrf.mxu0 }
 0x264   : > { %2851 = vst [vmem:[%s3830_s30 + $0x6a0] sm:$0xff] %v1208_v52 }
 0x265   : > { %v1417_v53 = vpop.f32.mrf.mxu1 }
 0x266   : > { %2852 = vst [vmem:[%s3830_s30 + $0x6a8] sm:$0xff] %v1417_v53 }
 0x267   : > { %v1626_v54 = vpop.f32.mrf.mxu2  ;;  %v1835_v55 = vpop.f32.mrf.mxu3 }
 0x268   : > { %2853 = vst [vmem:[%s3830_s30 + $0x6b0] sm:$0xff] %v1626_v54 }
 0x269   : > { %2854 = vst [vmem:[%s3830_s30 + $0x6b8] sm:$0xff] %v1835_v55 }
 0x26b   : > { %v1211_v56 = vpop.f32.mrf.mxu0 }
 0x26c   : > { %2855 = vst [vmem:[%s3830_s30 + $0x6c0] sm:$0xff] %v1211_v56 }
 0x26d   : > { %v1420_v57 = vpop.f32.mrf.mxu1 }
 0x26e   : > { %2856 = vst [vmem:[%s3830_s30 + $0x6c8] sm:$0xff] %v1420_v57 }
 0x26f   : > { %v1629_v58 = vpop.f32.mrf.mxu2  ;;  %v1838_v59 = vpop.f32.mrf.mxu3 }
 0x270   : > { %2857 = vst [vmem:[%s3830_s30 + $0x6d0] sm:$0xff] %v1629_v58 }
 0x271   : > { %2858 = vst [vmem:[%s3830_s30 + $0x6d8] sm:$0xff] %v1838_v59 }
 0x273   : > { %v1214_v60 = vpop.f32.mrf.mxu0 }
 0x274   : > { %2859 = vst [vmem:[%s3830_s30 + $0x6e0] sm:$0xff] %v1214_v60 }
 0x275   : > { %v1423_v61 = vpop.f32.mrf.mxu1 }
 0x276   : > { %2860 = vst [vmem:[%s3830_s30 + $0x6e8] sm:$0xff] %v1423_v61 }
 0x277   : > { %v1632_v62 = vpop.f32.mrf.mxu2  ;;  %v1841_v63 = vpop.f32.mrf.mxu3 }
 0x278   : > { %2861 = vst [vmem:[%s3830_s30 + $0x6f0] sm:$0xff] %v1632_v62 }
 0x279   : > { %2862 = vst [vmem:[%s3830_s30 + $0x6f8] sm:$0xff] %v1841_v63 }
 0x27b   : > { %v1217_v0 = vpop.f32.mrf.mxu0 }
 0x27c   : > { %2863 = vst [vmem:[%s3830_s30 + $0x700] sm:$0xff] %v1217_v0 }
 0x27d   : > { %v1426_v1 = vpop.f32.mrf.mxu1 }
 0x27e   : > { %2864 = vst [vmem:[%s3830_s30 + $0x708] sm:$0xff] %v1426_v1 }
 0x27f   : > { %v1635_v2 = vpop.f32.mrf.mxu2  ;;  %v1844_v3 = vpop.f32.mrf.mxu3 }
 0x280   : > { %2865 = vst [vmem:[%s3830_s30 + $0x710] sm:$0xff] %v1635_v2 }
 0x281   : > { %2866 = vst [vmem:[%s3830_s30 + $0x718] sm:$0xff] %v1844_v3 }
 0x283   : > { %v1220_v4 = vpop.f32.mrf.mxu0 }
 0x284   : > { %2867 = vst [vmem:[%s3830_s30 + $0x720] sm:$0xff] %v1220_v4 }
 0x285   : > { %v1429_v5 = vpop.f32.mrf.mxu1 }
 0x286   : > { %2868 = vst [vmem:[%s3830_s30 + $0x728] sm:$0xff] %v1429_v5 }
 0x287   : > { %v1638_v6 = vpop.f32.mrf.mxu2  ;;  %v1847_v7 = vpop.f32.mrf.mxu3 }
 0x288   : > { %2869 = vst [vmem:[%s3830_s30 + $0x730] sm:$0xff] %v1638_v6 }
 0x289   : > { %2870 = vst [vmem:[%s3830_s30 + $0x738] sm:$0xff] %v1847_v7 }
 0x28b   : > { %v1223_v8 = vpop.f32.mrf.mxu0 }
 0x28c   : > { %2871 = vst [vmem:[%s3830_s30 + $0x740] sm:$0xff] %v1223_v8 }
 0x28d   : > { %v1432_v9 = vpop.f32.mrf.mxu1 }
 0x28e   : > { %2872 = vst [vmem:[%s3830_s30 + $0x748] sm:$0xff] %v1432_v9 }
 0x28f   : > { %v1641_v10 = vpop.f32.mrf.mxu2  ;;  %v1850_v11 = vpop.f32.mrf.mxu3 }
 0x290   : > { %2873 = vst [vmem:[%s3830_s30 + $0x750] sm:$0xff] %v1641_v10 }
 0x291   : > { %2874 = vst [vmem:[%s3830_s30 + $0x758] sm:$0xff] %v1850_v11 }
 0x293   : > { %v1226_v12 = vpop.f32.mrf.mxu0 }
 0x294   : > { %2875 = vst [vmem:[%s3830_s30 + $0x760] sm:$0xff] %v1226_v12 }
 0x295   : > { %v1435_v13 = vpop.f32.mrf.mxu1 }
 0x296   : > { %2876 = vst [vmem:[%s3830_s30 + $0x768] sm:$0xff] %v1435_v13 }
 0x297   : > { %v1644_v14 = vpop.f32.mrf.mxu2  ;;  %v1853_v15 = vpop.f32.mrf.mxu3 }
 0x298   : > { %2877 = vst [vmem:[%s3830_s30 + $0x770] sm:$0xff] %v1644_v14 }
 0x299   : > { %2878 = vst [vmem:[%s3830_s30 + $0x778] sm:$0xff] %v1853_v15 }
 0x29b   : > { %v1229_v16 = vpop.f32.mrf.mxu0 }
 0x29c   : > { %2879 = vst [vmem:[%s3830_s30 + $0x780] sm:$0xff] %v1229_v16 }
 0x29d   : > { %v1438_v17 = vpop.f32.mrf.mxu1 }
 0x29e   : > { %2880 = vst [vmem:[%s3830_s30 + $0x788] sm:$0xff] %v1438_v17 }
 0x29f   : > { %v1647_v18 = vpop.f32.mrf.mxu2  ;;  %v1856_v19 = vpop.f32.mrf.mxu3 }
 0x2a0   : > { %2881 = vst [vmem:[%s3830_s30 + $0x790] sm:$0xff] %v1647_v18 }
 0x2a1   : > { %2882 = vst [vmem:[%s3830_s30 + $0x798] sm:$0xff] %v1856_v19 }
 0x2a3   : > { %v1232_v20 = vpop.f32.mrf.mxu0 }
 0x2a4   : > { %2883 = vst [vmem:[%s3830_s30 + $0x7a0] sm:$0xff] %v1232_v20 }
 0x2a5   : > { %v1441_v21 = vpop.f32.mrf.mxu1 }
 0x2a6   : > { %2884 = vst [vmem:[%s3830_s30 + $0x7a8] sm:$0xff] %v1441_v21 }
 0x2a7   : > { %v1650_v22 = vpop.f32.mrf.mxu2  ;;  %v1859_v23 = vpop.f32.mrf.mxu3 }
 0x2a8   : > { %2885 = vst [vmem:[%s3830_s30 + $0x7b0] sm:$0xff] %v1650_v22 }
 0x2a9   : > { %2886 = vst [vmem:[%s3830_s30 + $0x7b8] sm:$0xff] %v1859_v23 }
 0x2ab   : > { %v1235_v24 = vpop.f32.mrf.mxu0 }
 0x2ac   : > { %2887 = vst [vmem:[%s3830_s30 + $0x7c0] sm:$0xff] %v1235_v24 }
 0x2ad   : > { %v1444_v25 = vpop.f32.mrf.mxu1 }
 0x2ae   : > { %2888 = vst [vmem:[%s3830_s30 + $0x7c8] sm:$0xff] %v1444_v25 }
 0x2af   : > { %v1653_v26 = vpop.f32.mrf.mxu2  ;;  %v1862_v27 = vpop.f32.mrf.mxu3 }
 0x2b0   : > { %2889 = vst [vmem:[%s3830_s30 + $0x7d0] sm:$0xff] %v1653_v26 }
 0x2b1   : > { %2890 = vst [vmem:[%s3830_s30 + $0x7d8] sm:$0xff] %v1862_v27 }
 0x2b3   : > { %v1238_v28 = vpop.f32.mrf.mxu0 }
 0x2b4   : > { %2891 = vst [vmem:[%s3830_s30 + $0x7e0] sm:$0xff] %v1238_v28 }
 0x2b5   : > { %v1447_v29 = vpop.f32.mrf.mxu1 }
 0x2b6   : > { %2892 = vst [vmem:[%s3830_s30 + $0x7e8] sm:$0xff] %v1447_v29 }
 0x2b7   : > { %v1656_v30 = vpop.f32.mrf.mxu2  ;;  %v1865_v31 = vpop.f32.mrf.mxu3 }
 0x2b8   : > { %2893 = vst [vmem:[%s3830_s30 + $0x7f0] sm:$0xff] %v1656_v30 }
 0x2b9   : > { %2894 = vst [vmem:[%s3830_s30 + $0x7f8] sm:$0xff] %v1865_v31 }
 0x2ba   : > { %3464 = shalt.err (!%p3461_p1)
}
 0x2bb   : > { %s3564_s25 = smov 512   ;;  %s3565_s30 = smov 1024  }
 0x2bc   : > { %s3566_s20 = smov 32  }
 0x2bd   : > { %3301 = dma.vmem_to_hbm [thread:$0]  (%p3672_p13), %s2912_s16, 32768, %s2914_s18, %s2896_s22, %s3564_s25, %s3565_s30, %s3566_s20  }
 0x2be PF: > { %p3312_p4 = scmp.ge.s32.totalorder %s3559_s19, 2  ;;  %s2928_s12 = sand.u32 1, %s3519_s9  }
 0x2bf   : > { %s2929_s8 = scalar_lea.sflag [#allocation5], %s2928_s12 }
 0x2c0   : > { %p3308_p5 = pnand %p3312_p4, %p3677_p2 }
 0x2c2   : > { %p3309_p6 = pneg %p3308_p5 }
 0x2c4   : > { %3514 = dma.done.wait (%p3309_p6), %s2929_s8, 32768  }
 0x2c5   : > { %3516 = vsyncadd (%p3309_p6), %s2929_s8, 4294934528  ;;  %s18_s19 = sadd.s32 1, %s3559_s19   ;;  %s4394_s16 = sld [smem:[#allocation9_spill]] }
 0x2c6   : > { %p15_p7 = scmp.ge.s32.totalorder %s18_s19, 6   ;;  %s4395_s5 = sld [smem:[#allocation10_spill]] }
 0x2c7   : > { %s4396_s18 = sld [smem:[#allocation11_spill]]  ;;  %s4397_s9 = smov %s3523_s10 }
 0x2c8   : > { %s4398_s10 = smov %s3527_s11  ;;  %s4399_s11 = smov %s3670_s4 }
 0x2c9   : > { %s4400_s12 = smov %s3535_s13  ;;  %s4401_s13 = smov %s3539_s14 }
 0x2ca   : > { %s4402_s14 = smov %s3656_s27  ;;  %s4403_s15 = smov %s3551_s17 }
 0x2cb   :  { %17 = sbr.rel (!%p15_p7) target bundleno = 9 (0x9), region = 84 }
 0x2cc   : > { %s4404_s17 = smov %s4395_s5 }
 0x2d0   :  { %2935 = vsyncpa [#allocation4], 1 }
 0x2d1   :  { %2937 = vsyncpa [#allocation4 + $0x1], 1 }
 0x2d2   :  { %2938 = vsyncpa [#allocation5], 1 }
 0x2d3   :  { %2940 = vsyncpa [#allocation5 + $0x1], 1 }

</bundles_post_ra>
